<compile_context>
chip_gen: v7x
topology: tpu7x:2x2x1
jax: 0.10.0
libtpu: 0.0.40
codegen_flags: <defaults>
</compile_context>

<pallas_src>
import functools

import jax
import jax.numpy as jnp
import numpy as np
from jax.experimental import pallas as pl
from jax.experimental.pallas import tpu as pltpu


def _round_up(x, m):
    return (x + m - 1) // m * m


def dmn_lstm_kernel(x_ref, w1_ref, b1_ref, gamma_ref, beta_ref,
                    wih_ref, whh_ref, blstm_ref, wout_ref, bout_ref,
                    o_ref, seq_ref, xproj_ref, *, B, Bp, T, H, eps):
    """One grid step == one LSTM layer. seq_ref persists across grid steps."""
    layer = pl.program_id(0)
    num_layers = pl.num_programs(0)

    # ---- layer 0 only: input linear + tanh + fused BatchNorm1d (batch statistics) ----
    @pl.when(layer == 0)
    def _():
        y = jnp.tanh(jnp.dot(x_ref[...], w1_ref[...],
                             preferred_element_type=jnp.float32) + b1_ref[...])
        # Exclude padded batch rows (row % Bp >= B) from the statistics.
        row = jax.lax.broadcasted_iota(jnp.int32, y.shape, 0)
        yv = jnp.where((row % Bp) < B, y, 0.0)
        inv_n = 1.0 / float(T * B)
        mean = jnp.sum(yv, axis=0, keepdims=True) * inv_n
        var = jnp.sum(yv * yv, axis=0, keepdims=True) * inv_n - mean * mean
        scale = gamma_ref[...] * jax.lax.rsqrt(var + eps)
        shift = beta_ref[...] - mean * scale
        seq_ref[...] = y * scale + shift           # one FMA over the (T*Bp, Hp) slab

    # ---- LSTM layer `layer`: hoisted input projection (one big MXU matmul) ----
    xproj_ref[...] = (jnp.dot(seq_ref[...], wih_ref[...],
                              preferred_element_type=jnp.float32) + blstm_ref[...])
    whh = whh_ref[...]                             # (Hp, 4Hp), loop-invariant

    def step(t, carry):
        h, c = carry
        r0 = pl.multiple_of(t * Bp, Bp)            # sublane-aligned row offset
        gates = xproj_ref[pl.ds(r0, Bp), :] + jnp.dot(
            h, whh, preferred_element_type=jnp.float32)      # (Bp, 4Hp)
        # PyTorch gate order (i, f, g, o); each slice is lane-aligned (Hp % 128 == 0).
        i_g = jax.nn.sigmoid(gates[:, 0 * H:1 * H])
        f_g = jax.nn.sigmoid(gates[:, 1 * H:2 * H])
        g_g = jnp.tanh(gates[:, 2 * H:3 * H])
        o_g = jax.nn.sigmoid(gates[:, 3 * H:4 * H])
        c = f_g * c + i_g * g_g
        h = o_g * jnp.tanh(c)
        seq_ref[pl.ds(r0, Bp), :] = h              # layer output -> next layer input
        return h, c

    h0 = jnp.zeros((Bp, H), jnp.float32)
    c0 = jnp.zeros((Bp, H), jnp.float32)
    jax.lax.fori_loop(0, T, step, (h0, c0), unroll=(T <= 16))

    # ---- last layer only: output linear + tanh (lane-dense padded output) ----
    @pl.when(layer == num_layers - 1)
    def _():
        o_ref[...] = jnp.tanh(jnp.dot(seq_ref[...], wout_ref[...],
                                      preferred_element_type=jnp.float32) + bout_ref[...])


def dmn_lstm_forward(x, params, *, num_lstm_layer):
    B, T, in_dim = x.shape
    H = params["w1"].shape[1]
    out_dim = params["wout"].shape[1]
    L = num_lstm_layer
    f32 = jnp.float32

    Bp = _round_up(B, 8)        # sublane alignment
    Hp = _round_up(H, 128)      # lane alignment (gates become full-lane slices)
    Op = _round_up(out_dim, 128)  # lane-dense output store

    # --- zero-pad parameters; zeros keep padded channels exactly 0 through the net ---
    w1 = jnp.zeros((in_dim, Hp), f32).at[:, :H].set(params["w1"])
    b1 = jnp.zeros((1, Hp), f32).at[:, :H].set(params["b1"])
    gamma = jnp.zeros((1, Hp), f32).at[:, :H].set(params["gamma"])
    beta = jnp.zeros((1, Hp), f32).at[:, :H].set(params["beta"])

    wih = jnp.zeros((L, Hp, 4 * Hp), f32)
    whh = jnp.zeros((L, Hp, 4 * Hp), f32)
    blstm = jnp.zeros((L, 1, 4 * Hp), f32)
    for g in range(4):                       # remap each gate block H -> Hp
        src = slice(g * H, (g + 1) * H)
        dst = slice(g * Hp, g * Hp + H)
        wih = wih.at[:, :H, dst].set(params["wih"][:, :, src])
        whh = whh.at[:, :H, dst].set(params["whh"][:, :, src])
        blstm = blstm.at[:, :, dst].set(params["blstm"][:, :, src])

    wout = jnp.zeros((Hp, Op), f32).at[:H, :out_dim].set(params["wout"])
    bout = jnp.zeros((1, Op), f32).at[:, :out_dim].set(params["bout"])

    # (B, T, in) -> zero-pad batch -> time-major flat (T*Bp, in)
    x_p = jnp.zeros((Bp, T, in_dim), f32).at[:B].set(x.astype(f32))
    x_tm = jnp.transpose(x_p, (1, 0, 2)).reshape(T * Bp, in_dim)
    TB = T * Bp

    kernel = functools.partial(dmn_lstm_kernel, B=B, Bp=Bp, T=T, H=Hp, eps=1e-5)

    flops = (2 * TB * in_dim * Hp
             + L * (2 * TB * Hp * 4 * Hp        # hoisted x-projection
                    + 2 * TB * Hp * 4 * Hp)     # recurrent h @ whh over T steps
             + 2 * TB * Hp * Op)
    transcendentals = TB * Hp + L * TB * 5 * Hp + TB * Op
    bytes_accessed = 4 * (x_tm.size + w1.size + b1.size + gamma.size + beta.size
                          + wih.size + whh.size + blstm.size + wout.size + bout.size
                          + TB * Op)

    grid_spec = pltpu.PrefetchScalarGridSpec(
        num_scalar_prefetch=0,
        grid=(L,),
        in_specs=[
            pl.BlockSpec((TB, in_dim), lambda l: (0, 0)),        # x (resident)
            pl.BlockSpec((in_dim, Hp), lambda l: (0, 0)),        # w1
            pl.BlockSpec((1, Hp), lambda l: (0, 0)),             # b1
            pl.BlockSpec((1, Hp), lambda l: (0, 0)),             # gamma
            pl.BlockSpec((1, Hp), lambda l: (0, 0)),             # beta
            pl.BlockSpec((None, Hp, 4 * Hp), lambda l: (l, 0, 0)),  # wih[l]
            pl.BlockSpec((None, Hp, 4 * Hp), lambda l: (l, 0, 0)),  # whh[l]
            pl.BlockSpec((None, 1, 4 * Hp), lambda l: (l, 0, 0)),   # (b_ih+b_hh)[l]
            pl.BlockSpec((Hp, Op), lambda l: (0, 0)),            # wout
            pl.BlockSpec((1, Op), lambda l: (0, 0)),             # bout
        ],
        out_specs=pl.BlockSpec((TB, Op), lambda l: (0, 0)),
        scratch_shapes=[
            pltpu.VMEM((TB, Hp), jnp.float32),       # running sequence (persists across layers)
            pltpu.VMEM((TB, 4 * Hp), jnp.float32),   # hoisted per-layer gate pre-activations
        ],
    )

    out_tm = pl.pallas_call(
        kernel,
        out_shape=jax.ShapeDtypeStruct((TB, Op), jnp.float32),
        grid_spec=grid_spec,
        compiler_params=pltpu.CompilerParams(dimension_semantics=("arbitrary",)),
        cost_estimate=pl.CostEstimate(flops=int(flops),
                                      transcendentals=int(transcendentals),
                                      bytes_accessed=int(bytes_accessed)),
    )(x_tm, w1, b1, gamma, beta, wih, whh, blstm, wout, bout)

    # (T*Bp, Op) -> (B, T, out_dim): drop batch / lane padding.
    return out_tm.reshape(T, Bp, Op)[:, :B, :out_dim].transpose(1, 0, 2)


def dmn_lstm_ref(x, params, L):
    """Pure-JAX reference of the PyTorch forward (BN batch stats, no dropout)."""
    B, T, _ = x.shape
    H = params["w1"].shape[1]
    y = jnp.tanh(x @ params["w1"] + params["b1"])                       # (B,T,H)
    mean = jnp.mean(y, axis=(0, 1), keepdims=True)
    var = jnp.mean((y - mean) ** 2, axis=(0, 1), keepdims=True)
    y = (y - mean) / jnp.sqrt(var + 1e-5) * params["gamma"] + params["beta"]
    seq = jnp.transpose(y, (1, 0, 2))                                   # (T,B,H)
    for l in range(L):
        h = jnp.zeros((B, H), jnp.float32)
        c = jnp.zeros((B, H), jnp.float32)
        outs = []
        for t in range(T):
            gates = seq[t] @ params["wih"][l] + h @ params["whh"][l] + params["blstm"][l]
            i = jax.nn.sigmoid(gates[:, :H])
            f = jax.nn.sigmoid(gates[:, H:2 * H])
            g = jnp.tanh(gates[:, 2 * H:3 * H])
            o = jax.nn.sigmoid(gates[:, 3 * H:])
            c = f * c + i * g
            h = o * jnp.tanh(c)
            outs.append(h)
        seq = jnp.stack(outs, 0)
    out = jnp.transpose(seq, (1, 0, 2))
    return jnp.tanh(out @ params["wout"] + params["bout"])


def make_params(key, in_dim, hid_dim, out_dim, num_layers):
    ks = jax.random.split(key, 8)
    k_lin = 1.0 / np.sqrt(in_dim)
    k_hid = 1.0 / np.sqrt(hid_dim)

    def unif(k, shape, scale):
        return jax.random.uniform(k, shape, jnp.float32, -scale, scale)

    return {
        "w1": unif(ks[0], (in_dim, hid_dim), k_lin),
        "b1": unif(ks[1], (1, hid_dim), k_lin),
        "gamma": jnp.ones((1, hid_dim), jnp.float32),   # BatchNorm1d default affine
        "beta": jnp.zeros((1, hid_dim), jnp.float32),
        "wih": unif(ks[2], (num_layers, hid_dim, 4 * hid_dim), k_hid),
        "whh": unif(ks[3], (num_layers, hid_dim, 4 * hid_dim), k_hid),
        "blstm": unif(ks[4], (num_layers, 1, 4 * hid_dim), k_hid)
                 + unif(ks[5], (num_layers, 1, 4 * hid_dim), k_hid),   # b_ih + b_hh
        "wout": unif(ks[6], (hid_dim, out_dim), k_hid),
        "bout": unif(ks[7], (1, out_dim), k_hid),
    }


if __name__ == "__main__":
    B, T, in_dim, hid_dim, out_dim, num_layers = 2, 8, 16, 32, 8, 2

    key = jax.random.PRNGKey(0)
    kx, kp = jax.random.split(key)
    x = jax.random.normal(kx, (B, T, in_dim), jnp.float32)
    params = make_params(kp, in_dim, hid_dim, out_dim, num_layers)

    out = dmn_lstm_forward(x, params, num_lstm_layer=num_layers)
    out = jax.block_until_ready(out)

    assert out.shape == (B, T, out_dim), out.shape
    ref = dmn_lstm_ref(x, params, num_layers)
    if not np.allclose(np.asarray(out), np.asarray(ref), atol=2e-2, rtol=2e-2):
        raise AssertionError("Pallas kernel output does not match JAX reference")

    print("KERNEL_OK")
</pallas_src>

<mosaic_0001>
module attributes {stable_mosaic.version = 11 : i64} {
  func.func @dmn_lstm_kernel(%arg0: i32, %arg1: memref<64x16xf32, #tpu.memory_space<vmem>>, %arg2: memref<16x128xf32, #tpu.memory_space<vmem>>, %arg3: memref<1x128xf32, #tpu.memory_space<vmem>>, %arg4: memref<1x128xf32, #tpu.memory_space<vmem>>, %arg5: memref<1x128xf32, #tpu.memory_space<vmem>>, %arg6: memref<1x128x512xf32, #tpu.memory_space<vmem>>, %arg7: memref<1x128x512xf32, #tpu.memory_space<vmem>>, %arg8: memref<1x1x512xf32, #tpu.memory_space<vmem>>, %arg9: memref<128x128xf32, #tpu.memory_space<vmem>>, %arg10: memref<1x128xf32, #tpu.memory_space<vmem>>, %arg11: memref<64x128xf32, #tpu.memory_space<vmem>>, %arg12: memref<64x128xf32, #tpu.memory_space<vmem>>, %arg13: memref<64x512xf32, #tpu.memory_space<vmem>>) attributes {dimension_semantics = [#tpu.dimension_semantics<arbitrary>], iteration_bounds = array<i64: 2>, scalar_prefetch = 0 : i64, scratch_operands = 2 : i64, tpu.core_type = #tpu.core_type<tc>, window_params = [{pipeline_mode = #tpu.pipeline_mode<synchronous>, transform_indices = @transform_0, window_bounds = array<i64: 64, 16>}, {pipeline_mode = #tpu.pipeline_mode<synchronous>, transform_indices = @transform_1, window_bounds = array<i64: 16, 128>}, {pipeline_mode = #tpu.pipeline_mode<synchronous>, transform_indices = @transform_2, window_bounds = array<i64: 1, 128>}, {pipeline_mode = #tpu.pipeline_mode<synchronous>, transform_indices = @transform_3, window_bounds = array<i64: 1, 128>}, {pipeline_mode = #tpu.pipeline_mode<synchronous>, transform_indices = @transform_4, window_bounds = array<i64: 1, 128>}, {transform_indices = @transform_5, window_bounds = array<i64: 1, 128, 512>}, {transform_indices = @transform_6, window_bounds = array<i64: 1, 128, 512>}, {transform_indices = @transform_7, window_bounds = array<i64: 1, 1, 512>}, {pipeline_mode = #tpu.pipeline_mode<synchronous>, transform_indices = @transform_8, window_bounds = array<i64: 128, 128>}, {pipeline_mode = #tpu.pipeline_mode<synchronous>, transform_indices = @transform_9, window_bounds = array<i64: 1, 128>}, {pipeline_mode = #tpu.pipeline_mode<synchronous>, transform_indices = @transform_10, window_bounds = array<i64: 64, 128>}]} {
    %c0_i32 = arith.constant 0 : i32
    %0 = arith.cmpi eq, %arg0, %c0_i32 : i32
    %1 = arith.extui %0 : i1 to i32
    %c0_i32_0 = arith.constant 0 : i32
    %2 = arith.cmpi ne, %1, %c0_i32_0 : i32
    scf.if %2 {
      %c0_74 = arith.constant 0 : index
      %c0_75 = arith.constant 0 : index
      %283 = vector.load %arg1[%c0_74, %c0_75] : memref<64x16xf32, #tpu.memory_space<vmem>>, vector<64x16xf32>
      %c0_76 = arith.constant 0 : index
      %c0_77 = arith.constant 0 : index
      %284 = vector.load %arg2[%c0_76, %c0_77] : memref<16x128xf32, #tpu.memory_space<vmem>>, vector<16x128xf32>
      %cst_78 = arith.constant dense<0.000000e+00> : vector<64x128xf32>
      %285 = tpu.matmul %283, %284, %cst_78 {dimension_numbers = #tpu.dot_dimension_numbers<[1], [0], [0], [1], [0, 0, 1, 1], [], []>} : vector<64x16xf32>, vector<16x128xf32>, vector<64x128xf32> -> vector<64x128xf32>
      %c0_79 = arith.constant 0 : index
      %c0_80 = arith.constant 0 : index
      %286 = vector.load %arg3[%c0_79, %c0_80] : memref<1x128xf32, #tpu.memory_space<vmem>>, vector<1x128xf32>
      %287 = vector.broadcast %286 : vector<1x128xf32> to vector<64x128xf32>
      %288 = arith.addf %285, %287 : vector<64x128xf32>
      %289 = math.tanh %288 : vector<64x128xf32>
      %290 = tpu.iota {dimensions = array<i32: 0>} : vector<64x128xi32>
      %c8_i32_81 = arith.constant 8 : i32
      %c0_i32_82 = arith.constant 0 : i32
      %291 = arith.cmpi eq, %c8_i32_81, %c0_i32_82 : i32
      %c1_i32_83 = arith.constant 1 : i32
      %292 = arith.select %291, %c1_i32_83, %c8_i32_81 : i32
      %293 = vector.broadcast %292 : i32 to vector<64x128xi32>
      %294 = arith.remsi %290, %293 : vector<64x128xi32>
      %c0_i32_84 = arith.constant 0 : i32
      %295 = vector.broadcast %c0_i32_84 : i32 to vector<64x128xi32>
      %296 = arith.cmpi ne, %294, %295 : vector<64x128xi32>
      %c0_i32_85 = arith.constant 0 : i32
      %297 = vector.broadcast %c0_i32_85 : i32 to vector<64x128xi32>
      %298 = arith.cmpi slt, %294, %297 : vector<64x128xi32>
      %c0_i32_86 = arith.constant 0 : i32
      %299 = arith.cmpi slt, %292, %c0_i32_86 : i32
      %300 = vector.broadcast %299 : i1 to vector<64x128xi1>
      %301 = vector.broadcast %300 : vector<64x128xi1> to vector<64x128xi1>
      %302 = arith.xori %298, %301 : vector<64x128xi1>
      %303 = arith.andi %302, %296 : vector<64x128xi1>
      %304 = vector.broadcast %292 : i32 to vector<64x128xi32>
      %305 = arith.addi %294, %304 : vector<64x128xi32>
      %306 = arith.select %303, %305, %294 : vector<64x128xi1>, vector<64x128xi32>
      %c2_i32_87 = arith.constant 2 : i32
      %307 = vector.broadcast %c2_i32_87 : i32 to vector<64x128xi32>
      %308 = arith.cmpi slt, %306, %307 : vector<64x128xi32>
      %cst_88 = arith.constant 0.000000e+00 : f32
      %309 = vector.broadcast %cst_88 : f32 to vector<64x128xf32>
      %310 = arith.select %308, %289, %309 : vector<64x128xi1>, vector<64x128xf32>
      %cst_89 = arith.constant dense<0.000000e+00> : vector<128xf32>
      %311 = vector.multi_reduction <add>, %310, %cst_89 [0] : vector<64x128xf32> to vector<128xf32>
      %312 = vector.shape_cast %311 : vector<128xf32> to vector<1x128xf32>
      %cst_90 = arith.constant 6.250000e-02 : f32
      %313 = vector.broadcast %cst_90 : f32 to vector<1x128xf32>
      %314 = arith.mulf %312, %313 : vector<1x128xf32>
      %315 = arith.mulf %310, %310 : vector<64x128xf32>
      %cst_91 = arith.constant dense<0.000000e+00> : vector<128xf32>
      %316 = vector.multi_reduction <add>, %315, %cst_91 [0] : vector<64x128xf32> to vector<128xf32>
      %317 = vector.shape_cast %316 : vector<128xf32> to vector<1x128xf32>
      %cst_92 = arith.constant 6.250000e-02 : f32
      %318 = vector.broadcast %cst_92 : f32 to vector<1x128xf32>
      %319 = arith.mulf %317, %318 : vector<1x128xf32>
      %320 = arith.mulf %314, %314 : vector<1x128xf32>
      %321 = arith.subf %319, %320 : vector<1x128xf32>
      %c0_93 = arith.constant 0 : index
      %c0_94 = arith.constant 0 : index
      %322 = vector.load %arg4[%c0_93, %c0_94] : memref<1x128xf32, #tpu.memory_space<vmem>>, vector<1x128xf32>
      %cst_95 = arith.constant 9.99999974E-6 : f32
      %323 = vector.broadcast %cst_95 : f32 to vector<1x128xf32>
      %324 = arith.addf %321, %323 : vector<1x128xf32>
      %325 = math.rsqrt %324 : vector<1x128xf32>
      %326 = arith.mulf %322, %325 : vector<1x128xf32>
      %c0_96 = arith.constant 0 : index
      %c0_97 = arith.constant 0 : index
      %327 = vector.load %arg5[%c0_96, %c0_97] : memref<1x128xf32, #tpu.memory_space<vmem>>, vector<1x128xf32>
      %328 = arith.mulf %314, %326 : vector<1x128xf32>
      %329 = arith.subf %327, %328 : vector<1x128xf32>
      %330 = vector.broadcast %326 : vector<1x128xf32> to vector<64x128xf32>
      %331 = arith.mulf %289, %330 : vector<64x128xf32>
      %332 = vector.broadcast %329 : vector<1x128xf32> to vector<64x128xf32>
      %333 = arith.addf %331, %332 : vector<64x128xf32>
      %c0_98 = arith.constant 0 : index
      %c0_99 = arith.constant 0 : index
      %334 = vector.load %arg12[%c0_98, %c0_99] : memref<64x128xf32, #tpu.memory_space<vmem>>, vector<64x128xf32>
      tpu.vector_store %arg12[%c0_98, %c0_99], %333 {strides = array<i32>} : memref<64x128xf32, #tpu.memory_space<vmem>>, vector<64x128xf32>,
    } else {
    }
    %c0 = arith.constant 0 : index
    %c0_1 = arith.constant 0 : index
    %3 = vector.load %arg12[%c0, %c0_1] : memref<64x128xf32, #tpu.memory_space<vmem>>, vector<64x128xf32>
    %c0_2 = arith.constant 0 : index
    %c0_3 = arith.constant 0 : index
    %c0_4 = arith.constant 0 : index
    %4 = vector.load %arg6[%c0_2, %c0_3, %c0_4] : memref<1x128x512xf32, #tpu.memory_space<vmem>>, vector<1x128x512xf32>
    %5 = vector.shape_cast %4 : vector<1x128x512xf32> to vector<128x512xf32>
    %cst = arith.constant dense<0.000000e+00> : vector<64x512xf32>
    %6 = tpu.matmul %3, %5, %cst {dimension_numbers = #tpu.dot_dimension_numbers<[1], [0], [0], [1], [0, 0, 1, 1], [], []>} : vector<64x128xf32>, vector<128x512xf32>, vector<64x512xf32> -> vector<64x512xf32>
    %c0_5 = arith.constant 0 : index
    %c0_6 = arith.constant 0 : index
    %c0_7 = arith.constant 0 : index
    %7 = vector.load %arg8[%c0_5, %c0_6, %c0_7] : memref<1x1x512xf32, #tpu.memory_space<vmem>>, vector<1x1x512xf32>
    %8 = vector.shape_cast %7 : vector<1x1x512xf32> to vector<1x512xf32>
    %9 = vector.broadcast %8 : vector<1x512xf32> to vector<64x512xf32>
    %10 = arith.addf %6, %9 : vector<64x512xf32>
    %c0_8 = arith.constant 0 : index
    %c0_9 = arith.constant 0 : index
    %11 = vector.load %arg13[%c0_8, %c0_9] : memref<64x512xf32, #tpu.memory_space<vmem>>, vector<64x512xf32>
    tpu.vector_store %arg13[%c0_8, %c0_9], %10 {strides = array<i32>} : memref<64x512xf32, #tpu.memory_space<vmem>>, vector<64x512xf32>,
    %c0_10 = arith.constant 0 : index
    %c0_11 = arith.constant 0 : index
    %c0_12 = arith.constant 0 : index
    %12 = vector.load %arg7[%c0_10, %c0_11, %c0_12] : memref<1x128x512xf32, #tpu.memory_space<vmem>>, vector<1x128x512xf32>
    %13 = vector.shape_cast %12 : vector<1x128x512xf32> to vector<128x512xf32>
    %cst_13 = arith.constant 0.000000e+00 : f32
    %14 = vector.broadcast %cst_13 : f32 to vector<8x128xf32>
    %cst_14 = arith.constant 0.000000e+00 : f32
    %15 = vector.broadcast %cst_14 : f32 to vector<8x128xf32>
    %c0_i32_15 = arith.constant 0 : i32
    %c8_i32 = arith.constant 8 : i32
    %16 = arith.muli %c0_i32_15, %c8_i32 : i32
    %17 = tpu.assume_multiple %16, 8 : i32
    %18 = arith.index_cast %17 : i32 to index
    %c0_16 = arith.constant 0 : index
    %19 = vector.load %arg13[%18, %c0_16] : memref<64x512xf32, #tpu.memory_space<vmem>>, vector<8x512xf32>
    %cst_17 = arith.constant dense<0.000000e+00> : vector<8x512xf32>
    %20 = tpu.matmul %14, %13, %cst_17 {dimension_numbers = #tpu.dot_dimension_numbers<[1], [0], [0], [1], [0, 0, 1, 1], [], []>} : vector<8x128xf32>, vector<128x512xf32>, vector<8x512xf32> -> vector<8x512xf32>
    %21 = arith.addf %19, %20 : vector<8x512xf32>
    %22 = vector.extract_strided_slice %21 {offsets = [0, 0], sizes = [8, 128], strides = [1, 1]} : vector<8x512xf32> to vector<8x128xf32>
    %23 = arith.negf %22 : vector<8x128xf32>
    %24 = math.exp %23 : vector<8x128xf32>
    %cst_18 = arith.constant 1.000000e+00 : f32
    %25 = vector.broadcast %cst_18 : f32 to vector<8x128xf32>
    %26 = arith.addf %25, %24 : vector<8x128xf32>
    %27 = arith.divf %25, %26 : vector<8x128xf32>
    %28 = vector.extract_strided_slice %21 {offsets = [0, 128], sizes = [8, 128], strides = [1, 1]} : vector<8x512xf32> to vector<8x128xf32>
    %29 = arith.negf %28 : vector<8x128xf32>
    %30 = math.exp %29 : vector<8x128xf32>
    %cst_19 = arith.constant 1.000000e+00 : f32
    %31 = vector.broadcast %cst_19 : f32 to vector<8x128xf32>
    %32 = arith.addf %31, %30 : vector<8x128xf32>
    %33 = arith.divf %31, %32 : vector<8x128xf32>
    %34 = vector.extract_strided_slice %21 {offsets = [0, 256], sizes = [8, 128], strides = [1, 1]} : vector<8x512xf32> to vector<8x128xf32>
    %35 = math.tanh %34 : vector<8x128xf32>
    %36 = vector.extract_strided_slice %21 {offsets = [0, 384], sizes = [8, 128], strides = [1, 1]} : vector<8x512xf32> to vector<8x128xf32>
    %37 = arith.negf %36 : vector<8x128xf32>
    %38 = math.exp %37 : vector<8x128xf32>
    %cst_20 = arith.constant 1.000000e+00 : f32
    %39 = vector.broadcast %cst_20 : f32 to vector<8x128xf32>
    %40 = arith.addf %39, %38 : vector<8x128xf32>
    %41 = arith.divf %39, %40 : vector<8x128xf32>
    %42 = arith.mulf %33, %15 : vector<8x128xf32>
    %43 = arith.mulf %27, %35 : vector<8x128xf32>
    %44 = arith.addf %42, %43 : vector<8x128xf32>
    %45 = math.tanh %44 : vector<8x128xf32>
    %46 = arith.mulf %41, %45 : vector<8x128xf32>
    %47 = arith.index_cast %17 : i32 to index
    %c0_21 = arith.constant 0 : index
    %48 = vector.load %arg12[%47, %c0_21] : memref<64x128xf32, #tpu.memory_space<vmem>>, vector<8x128xf32>
    tpu.vector_store %arg12[%47, %c0_21], %46 {strides = array<i32>} : memref<64x128xf32, #tpu.memory_space<vmem>>, vector<8x128xf32>,
    %c1_i32 = arith.constant 1 : i32
    %c8_i32_22 = arith.constant 8 : i32
    %49 = arith.muli %c1_i32, %c8_i32_22 : i32
    %50 = tpu.assume_multiple %49, 8 : i32
    %51 = arith.index_cast %50 : i32 to index
    %c0_23 = arith.constant 0 : index
    %52 = vector.load %arg13[%51, %c0_23] : memref<64x512xf32, #tpu.memory_space<vmem>>, vector<8x512xf32>
    %cst_24 = arith.constant dense<0.000000e+00> : vector<8x512xf32>
    %53 = tpu.matmul %46, %13, %cst_24 {dimension_numbers = #tpu.dot_dimension_numbers<[1], [0], [0], [1], [0, 0, 1, 1], [], []>} : vector<8x128xf32>, vector<128x512xf32>, vector<8x512xf32> -> vector<8x512xf32>
    %54 = arith.addf %52, %53 : vector<8x512xf32>
    %55 = vector.extract_strided_slice %54 {offsets = [0, 0], sizes = [8, 128], strides = [1, 1]} : vector<8x512xf32> to vector<8x128xf32>
    %56 = arith.negf %55 : vector<8x128xf32>
    %57 = math.exp %56 : vector<8x128xf32>
    %cst_25 = arith.constant 1.000000e+00 : f32
    %58 = vector.broadcast %cst_25 : f32 to vector<8x128xf32>
    %59 = arith.addf %58, %57 : vector<8x128xf32>
    %60 = arith.divf %58, %59 : vector<8x128xf32>
    %61 = vector.extract_strided_slice %54 {offsets = [0, 128], sizes = [8, 128], strides = [1, 1]} : vector<8x512xf32> to vector<8x128xf32>
    %62 = arith.negf %61 : vector<8x128xf32>
    %63 = math.exp %62 : vector<8x128xf32>
    %cst_26 = arith.constant 1.000000e+00 : f32
    %64 = vector.broadcast %cst_26 : f32 to vector<8x128xf32>
    %65 = arith.addf %64, %63 : vector<8x128xf32>
    %66 = arith.divf %64, %65 : vector<8x128xf32>
    %67 = vector.extract_strided_slice %54 {offsets = [0, 256], sizes = [8, 128], strides = [1, 1]} : vector<8x512xf32> to vector<8x128xf32>
    %68 = math.tanh %67 : vector<8x128xf32>
    %69 = vector.extract_strided_slice %54 {offsets = [0, 384], sizes = [8, 128], strides = [1, 1]} : vector<8x512xf32> to vector<8x128xf32>
    %70 = arith.negf %69 : vector<8x128xf32>
    %71 = math.exp %70 : vector<8x128xf32>
    %cst_27 = arith.constant 1.000000e+00 : f32
    %72 = vector.broadcast %cst_27 : f32 to vector<8x128xf32>
    %73 = arith.addf %72, %71 : vector<8x128xf32>
    %74 = arith.divf %72, %73 : vector<8x128xf32>
    %75 = arith.mulf %66, %44 : vector<8x128xf32>
    %76 = arith.mulf %60, %68 : vector<8x128xf32>
    %77 = arith.addf %75, %76 : vector<8x128xf32>
    %78 = math.tanh %77 : vector<8x128xf32>
    %79 = arith.mulf %74, %78 : vector<8x128xf32>
    %80 = arith.index_cast %50 : i32 to index
    %c0_28 = arith.constant 0 : index
    %81 = vector.load %arg12[%80, %c0_28] : memref<64x128xf32, #tpu.memory_space<vmem>>, vector<8x128xf32>
    tpu.vector_store %arg12[%80, %c0_28], %79 {strides = array<i32>} : memref<64x128xf32, #tpu.memory_space<vmem>>, vector<8x128xf32>,
    %c2_i32 = arith.constant 2 : i32
    %c8_i32_29 = arith.constant 8 : i32
    %82 = arith.muli %c2_i32, %c8_i32_29 : i32
    %83 = tpu.assume_multiple %82, 8 : i32
    %84 = arith.index_cast %83 : i32 to index
    %c0_30 = arith.constant 0 : index
    %85 = vector.load %arg13[%84, %c0_30] : memref<64x512xf32, #tpu.memory_space<vmem>>, vector<8x512xf32>
    %cst_31 = arith.constant dense<0.000000e+00> : vector<8x512xf32>
    %86 = tpu.matmul %79, %13, %cst_31 {dimension_numbers = #tpu.dot_dimension_numbers<[1], [0], [0], [1], [0, 0, 1, 1], [], []>} : vector<8x128xf32>, vector<128x512xf32>, vector<8x512xf32> -> vector<8x512xf32>
    %87 = arith.addf %85, %86 : vector<8x512xf32>
    %88 = vector.extract_strided_slice %87 {offsets = [0, 0], sizes = [8, 128], strides = [1, 1]} : vector<8x512xf32> to vector<8x128xf32>
    %89 = arith.negf %88 : vector<8x128xf32>
    %90 = math.exp %89 : vector<8x128xf32>
    %cst_32 = arith.constant 1.000000e+00 : f32
    %91 = vector.broadcast %cst_32 : f32 to vector<8x128xf32>
    %92 = arith.addf %91, %90 : vector<8x128xf32>
    %93 = arith.divf %91, %92 : vector<8x128xf32>
    %94 = vector.extract_strided_slice %87 {offsets = [0, 128], sizes = [8, 128], strides = [1, 1]} : vector<8x512xf32> to vector<8x128xf32>
    %95 = arith.negf %94 : vector<8x128xf32>
    %96 = math.exp %95 : vector<8x128xf32>
    %cst_33 = arith.constant 1.000000e+00 : f32
    %97 = vector.broadcast %cst_33 : f32 to vector<8x128xf32>
    %98 = arith.addf %97, %96 : vector<8x128xf32>
    %99 = arith.divf %97, %98 : vector<8x128xf32>
    %100 = vector.extract_strided_slice %87 {offsets = [0, 256], sizes = [8, 128], strides = [1, 1]} : vector<8x512xf32> to vector<8x128xf32>
    %101 = math.tanh %100 : vector<8x128xf32>
    %102 = vector.extract_strided_slice %87 {offsets = [0, 384], sizes = [8, 128], strides = [1, 1]} : vector<8x512xf32> to vector<8x128xf32>
    %103 = arith.negf %102 : vector<8x128xf32>
    %104 = math.exp %103 : vector<8x128xf32>
    %cst_34 = arith.constant 1.000000e+00 : f32
    %105 = vector.broadcast %cst_34 : f32 to vector<8x128xf32>
    %106 = arith.addf %105, %104 : vector<8x128xf32>
    %107 = arith.divf %105, %106 : vector<8x128xf32>
    %108 = arith.mulf %99, %77 : vector<8x128xf32>
    %109 = arith.mulf %93, %101 : vector<8x128xf32>
    %110 = arith.addf %108, %109 : vector<8x128xf32>
    %111 = math.tanh %110 : vector<8x128xf32>
    %112 = arith.mulf %107, %111 : vector<8x128xf32>
    %113 = arith.index_cast %83 : i32 to index
    %c0_35 = arith.constant 0 : index
    %114 = vector.load %arg12[%113, %c0_35] : memref<64x128xf32, #tpu.memory_space<vmem>>, vector<8x128xf32>
    tpu.vector_store %arg12[%113, %c0_35], %112 {strides = array<i32>} : memref<64x128xf32, #tpu.memory_space<vmem>>, vector<8x128xf32>,
    %c3_i32 = arith.constant 3 : i32
    %c8_i32_36 = arith.constant 8 : i32
    %115 = arith.muli %c3_i32, %c8_i32_36 : i32
    %116 = tpu.assume_multiple %115, 8 : i32
    %117 = arith.index_cast %116 : i32 to index
    %c0_37 = arith.constant 0 : index
    %118 = vector.load %arg13[%117, %c0_37] : memref<64x512xf32, #tpu.memory_space<vmem>>, vector<8x512xf32>
    %cst_38 = arith.constant dense<0.000000e+00> : vector<8x512xf32>
    %119 = tpu.matmul %112, %13, %cst_38 {dimension_numbers = #tpu.dot_dimension_numbers<[1], [0], [0], [1], [0, 0, 1, 1], [], []>} : vector<8x128xf32>, vector<128x512xf32>, vector<8x512xf32> -> vector<8x512xf32>
    %120 = arith.addf %118, %119 : vector<8x512xf32>
    %121 = vector.extract_strided_slice %120 {offsets = [0, 0], sizes = [8, 128], strides = [1, 1]} : vector<8x512xf32> to vector<8x128xf32>
    %122 = arith.negf %121 : vector<8x128xf32>
    %123 = math.exp %122 : vector<8x128xf32>
    %cst_39 = arith.constant 1.000000e+00 : f32
    %124 = vector.broadcast %cst_39 : f32 to vector<8x128xf32>
    %125 = arith.addf %124, %123 : vector<8x128xf32>
    %126 = arith.divf %124, %125 : vector<8x128xf32>
    %127 = vector.extract_strided_slice %120 {offsets = [0, 128], sizes = [8, 128], strides = [1, 1]} : vector<8x512xf32> to vector<8x128xf32>
    %128 = arith.negf %127 : vector<8x128xf32>
    %129 = math.exp %128 : vector<8x128xf32>
    %cst_40 = arith.constant 1.000000e+00 : f32
    %130 = vector.broadcast %cst_40 : f32 to vector<8x128xf32>
    %131 = arith.addf %130, %129 : vector<8x128xf32>
    %132 = arith.divf %130, %131 : vector<8x128xf32>
    %133 = vector.extract_strided_slice %120 {offsets = [0, 256], sizes = [8, 128], strides = [1, 1]} : vector<8x512xf32> to vector<8x128xf32>
    %134 = math.tanh %133 : vector<8x128xf32>
    %135 = vector.extract_strided_slice %120 {offsets = [0, 384], sizes = [8, 128], strides = [1, 1]} : vector<8x512xf32> to vector<8x128xf32>
    %136 = arith.negf %135 : vector<8x128xf32>
    %137 = math.exp %136 : vector<8x128xf32>
    %cst_41 = arith.constant 1.000000e+00 : f32
    %138 = vector.broadcast %cst_41 : f32 to vector<8x128xf32>
    %139 = arith.addf %138, %137 : vector<8x128xf32>
    %140 = arith.divf %138, %139 : vector<8x128xf32>
    %141 = arith.mulf %132, %110 : vector<8x128xf32>
    %142 = arith.mulf %126, %134 : vector<8x128xf32>
    %143 = arith.addf %141, %142 : vector<8x128xf32>
    %144 = math.tanh %143 : vector<8x128xf32>
    %145 = arith.mulf %140, %144 : vector<8x128xf32>
    %146 = arith.index_cast %116 : i32 to index
    %c0_42 = arith.constant 0 : index
    %147 = vector.load %arg12[%146, %c0_42] : memref<64x128xf32, #tpu.memory_space<vmem>>, vector<8x128xf32>
    tpu.vector_store %arg12[%146, %c0_42], %145 {strides = array<i32>} : memref<64x128xf32, #tpu.memory_space<vmem>>, vector<8x128xf32>,
    %c4_i32 = arith.constant 4 : i32
    %c8_i32_43 = arith.constant 8 : i32
    %148 = arith.muli %c4_i32, %c8_i32_43 : i32
    %149 = tpu.assume_multiple %148, 8 : i32
    %150 = arith.index_cast %149 : i32 to index
    %c0_44 = arith.constant 0 : index
    %151 = vector.load %arg13[%150, %c0_44] : memref<64x512xf32, #tpu.memory_space<vmem>>, vector<8x512xf32>
    %cst_45 = arith.constant dense<0.000000e+00> : vector<8x512xf32>
    %152 = tpu.matmul %145, %13, %cst_45 {dimension_numbers = #tpu.dot_dimension_numbers<[1], [0], [0], [1], [0, 0, 1, 1], [], []>} : vector<8x128xf32>, vector<128x512xf32>, vector<8x512xf32> -> vector<8x512xf32>
    %153 = arith.addf %151, %152 : vector<8x512xf32>
    %154 = vector.extract_strided_slice %153 {offsets = [0, 0], sizes = [8, 128], strides = [1, 1]} : vector<8x512xf32> to vector<8x128xf32>
    %155 = arith.negf %154 : vector<8x128xf32>
    %156 = math.exp %155 : vector<8x128xf32>
    %cst_46 = arith.constant 1.000000e+00 : f32
    %157 = vector.broadcast %cst_46 : f32 to vector<8x128xf32>
    %158 = arith.addf %157, %156 : vector<8x128xf32>
    %159 = arith.divf %157, %158 : vector<8x128xf32>
    %160 = vector.extract_strided_slice %153 {offsets = [0, 128], sizes = [8, 128], strides = [1, 1]} : vector<8x512xf32> to vector<8x128xf32>
    %161 = arith.negf %160 : vector<8x128xf32>
    %162 = math.exp %161 : vector<8x128xf32>
    %cst_47 = arith.constant 1.000000e+00 : f32
    %163 = vector.broadcast %cst_47 : f32 to vector<8x128xf32>
    %164 = arith.addf %163, %162 : vector<8x128xf32>
    %165 = arith.divf %163, %164 : vector<8x128xf32>
    %166 = vector.extract_strided_slice %153 {offsets = [0, 256], sizes = [8, 128], strides = [1, 1]} : vector<8x512xf32> to vector<8x128xf32>
    %167 = math.tanh %166 : vector<8x128xf32>
    %168 = vector.extract_strided_slice %153 {offsets = [0, 384], sizes = [8, 128], strides = [1, 1]} : vector<8x512xf32> to vector<8x128xf32>
    %169 = arith.negf %168 : vector<8x128xf32>
    %170 = math.exp %169 : vector<8x128xf32>
    %cst_48 = arith.constant 1.000000e+00 : f32
    %171 = vector.broadcast %cst_48 : f32 to vector<8x128xf32>
    %172 = arith.addf %171, %170 : vector<8x128xf32>
    %173 = arith.divf %171, %172 : vector<8x128xf32>
    %174 = arith.mulf %165, %143 : vector<8x128xf32>
    %175 = arith.mulf %159, %167 : vector<8x128xf32>
    %176 = arith.addf %174, %175 : vector<8x128xf32>
    %177 = math.tanh %176 : vector<8x128xf32>
    %178 = arith.mulf %173, %177 : vector<8x128xf32>
    %179 = arith.index_cast %149 : i32 to index
    %c0_49 = arith.constant 0 : index
    %180 = vector.load %arg12[%179, %c0_49] : memref<64x128xf32, #tpu.memory_space<vmem>>, vector<8x128xf32>
    tpu.vector_store %arg12[%179, %c0_49], %178 {strides = array<i32>} : memref<64x128xf32, #tpu.memory_space<vmem>>, vector<8x128xf32>,
    %c5_i32 = arith.constant 5 : i32
    %c8_i32_50 = arith.constant 8 : i32
    %181 = arith.muli %c5_i32, %c8_i32_50 : i32
    %182 = tpu.assume_multiple %181, 8 : i32
    %183 = arith.index_cast %182 : i32 to index
    %c0_51 = arith.constant 0 : index
    %184 = vector.load %arg13[%183, %c0_51] : memref<64x512xf32, #tpu.memory_space<vmem>>, vector<8x512xf32>
    %cst_52 = arith.constant dense<0.000000e+00> : vector<8x512xf32>
    %185 = tpu.matmul %178, %13, %cst_52 {dimension_numbers = #tpu.dot_dimension_numbers<[1], [0], [0], [1], [0, 0, 1, 1], [], []>} : vector<8x128xf32>, vector<128x512xf32>, vector<8x512xf32> -> vector<8x512xf32>
    %186 = arith.addf %184, %185 : vector<8x512xf32>
    %187 = vector.extract_strided_slice %186 {offsets = [0, 0], sizes = [8, 128], strides = [1, 1]} : vector<8x512xf32> to vector<8x128xf32>
    %188 = arith.negf %187 : vector<8x128xf32>
    %189 = math.exp %188 : vector<8x128xf32>
    %cst_53 = arith.constant 1.000000e+00 : f32
    %190 = vector.broadcast %cst_53 : f32 to vector<8x128xf32>
    %191 = arith.addf %190, %189 : vector<8x128xf32>
    %192 = arith.divf %190, %191 : vector<8x128xf32>
    %193 = vector.extract_strided_slice %186 {offsets = [0, 128], sizes = [8, 128], strides = [1, 1]} : vector<8x512xf32> to vector<8x128xf32>
    %194 = arith.negf %193 : vector<8x128xf32>
    %195 = math.exp %194 : vector<8x128xf32>
    %cst_54 = arith.constant 1.000000e+00 : f32
    %196 = vector.broadcast %cst_54 : f32 to vector<8x128xf32>
    %197 = arith.addf %196, %195 : vector<8x128xf32>
    %198 = arith.divf %196, %197 : vector<8x128xf32>
    %199 = vector.extract_strided_slice %186 {offsets = [0, 256], sizes = [8, 128], strides = [1, 1]} : vector<8x512xf32> to vector<8x128xf32>
    %200 = math.tanh %199 : vector<8x128xf32>
    %201 = vector.extract_strided_slice %186 {offsets = [0, 384], sizes = [8, 128], strides = [1, 1]} : vector<8x512xf32> to vector<8x128xf32>
    %202 = arith.negf %201 : vector<8x128xf32>
    %203 = math.exp %202 : vector<8x128xf32>
    %cst_55 = arith.constant 1.000000e+00 : f32
    %204 = vector.broadcast %cst_55 : f32 to vector<8x128xf32>
    %205 = arith.addf %204, %203 : vector<8x128xf32>
    %206 = arith.divf %204, %205 : vector<8x128xf32>
    %207 = arith.mulf %198, %176 : vector<8x128xf32>
    %208 = arith.mulf %192, %200 : vector<8x128xf32>
    %209 = arith.addf %207, %208 : vector<8x128xf32>
    %210 = math.tanh %209 : vector<8x128xf32>
    %211 = arith.mulf %206, %210 : vector<8x128xf32>
    %212 = arith.index_cast %182 : i32 to index
    %c0_56 = arith.constant 0 : index
    %213 = vector.load %arg12[%212, %c0_56] : memref<64x128xf32, #tpu.memory_space<vmem>>, vector<8x128xf32>
    tpu.vector_store %arg12[%212, %c0_56], %211 {strides = array<i32>} : memref<64x128xf32, #tpu.memory_space<vmem>>, vector<8x128xf32>,
    %c6_i32 = arith.constant 6 : i32
    %c8_i32_57 = arith.constant 8 : i32
    %214 = arith.muli %c6_i32, %c8_i32_57 : i32
    %215 = tpu.assume_multiple %214, 8 : i32
    %216 = arith.index_cast %215 : i32 to index
    %c0_58 = arith.constant 0 : index
    %217 = vector.load %arg13[%216, %c0_58] : memref<64x512xf32, #tpu.memory_space<vmem>>, vector<8x512xf32>
    %cst_59 = arith.constant dense<0.000000e+00> : vector<8x512xf32>
    %218 = tpu.matmul %211, %13, %cst_59 {dimension_numbers = #tpu.dot_dimension_numbers<[1], [0], [0], [1], [0, 0, 1, 1], [], []>} : vector<8x128xf32>, vector<128x512xf32>, vector<8x512xf32> -> vector<8x512xf32>
    %219 = arith.addf %217, %218 : vector<8x512xf32>
    %220 = vector.extract_strided_slice %219 {offsets = [0, 0], sizes = [8, 128], strides = [1, 1]} : vector<8x512xf32> to vector<8x128xf32>
    %221 = arith.negf %220 : vector<8x128xf32>
    %222 = math.exp %221 : vector<8x128xf32>
    %cst_60 = arith.constant 1.000000e+00 : f32
    %223 = vector.broadcast %cst_60 : f32 to vector<8x128xf32>
    %224 = arith.addf %223, %222 : vector<8x128xf32>
    %225 = arith.divf %223, %224 : vector<8x128xf32>
    %226 = vector.extract_strided_slice %219 {offsets = [0, 128], sizes = [8, 128], strides = [1, 1]} : vector<8x512xf32> to vector<8x128xf32>
    %227 = arith.negf %226 : vector<8x128xf32>
    %228 = math.exp %227 : vector<8x128xf32>
    %cst_61 = arith.constant 1.000000e+00 : f32
    %229 = vector.broadcast %cst_61 : f32 to vector<8x128xf32>
    %230 = arith.addf %229, %228 : vector<8x128xf32>
    %231 = arith.divf %229, %230 : vector<8x128xf32>
    %232 = vector.extract_strided_slice %219 {offsets = [0, 256], sizes = [8, 128], strides = [1, 1]} : vector<8x512xf32> to vector<8x128xf32>
    %233 = math.tanh %232 : vector<8x128xf32>
    %234 = vector.extract_strided_slice %219 {offsets = [0, 384], sizes = [8, 128], strides = [1, 1]} : vector<8x512xf32> to vector<8x128xf32>
    %235 = arith.negf %234 : vector<8x128xf32>
    %236 = math.exp %235 : vector<8x128xf32>
    %cst_62 = arith.constant 1.000000e+00 : f32
    %237 = vector.broadcast %cst_62 : f32 to vector<8x128xf32>
    %238 = arith.addf %237, %236 : vector<8x128xf32>
    %239 = arith.divf %237, %238 : vector<8x128xf32>
    %240 = arith.mulf %231, %209 : vector<8x128xf32>
    %241 = arith.mulf %225, %233 : vector<8x128xf32>
    %242 = arith.addf %240, %241 : vector<8x128xf32>
    %243 = math.tanh %242 : vector<8x128xf32>
    %244 = arith.mulf %239, %243 : vector<8x128xf32>
    %245 = arith.index_cast %215 : i32 to index
    %c0_63 = arith.constant 0 : index
    %246 = vector.load %arg12[%245, %c0_63] : memref<64x128xf32, #tpu.memory_space<vmem>>, vector<8x128xf32>
    tpu.vector_store %arg12[%245, %c0_63], %244 {strides = array<i32>} : memref<64x128xf32, #tpu.memory_space<vmem>>, vector<8x128xf32>,
    %c7_i32 = arith.constant 7 : i32
    %c8_i32_64 = arith.constant 8 : i32
    %247 = arith.muli %c7_i32, %c8_i32_64 : i32
    %248 = tpu.assume_multiple %247, 8 : i32
    %249 = arith.index_cast %248 : i32 to index
    %c0_65 = arith.constant 0 : index
    %250 = vector.load %arg13[%249, %c0_65] : memref<64x512xf32, #tpu.memory_space<vmem>>, vector<8x512xf32>
    %cst_66 = arith.constant dense<0.000000e+00> : vector<8x512xf32>
    %251 = tpu.matmul %244, %13, %cst_66 {dimension_numbers = #tpu.dot_dimension_numbers<[1], [0], [0], [1], [0, 0, 1, 1], [], []>} : vector<8x128xf32>, vector<128x512xf32>, vector<8x512xf32> -> vector<8x512xf32>
    %252 = arith.addf %250, %251 : vector<8x512xf32>
    %253 = vector.extract_strided_slice %252 {offsets = [0, 0], sizes = [8, 128], strides = [1, 1]} : vector<8x512xf32> to vector<8x128xf32>
    %254 = arith.negf %253 : vector<8x128xf32>
    %255 = math.exp %254 : vector<8x128xf32>
    %cst_67 = arith.constant 1.000000e+00 : f32
    %256 = vector.broadcast %cst_67 : f32 to vector<8x128xf32>
    %257 = arith.addf %256, %255 : vector<8x128xf32>
    %258 = arith.divf %256, %257 : vector<8x128xf32>
    %259 = vector.extract_strided_slice %252 {offsets = [0, 128], sizes = [8, 128], strides = [1, 1]} : vector<8x512xf32> to vector<8x128xf32>
    %260 = arith.negf %259 : vector<8x128xf32>
    %261 = math.exp %260 : vector<8x128xf32>
    %cst_68 = arith.constant 1.000000e+00 : f32
    %262 = vector.broadcast %cst_68 : f32 to vector<8x128xf32>
    %263 = arith.addf %262, %261 : vector<8x128xf32>
    %264 = arith.divf %262, %263 : vector<8x128xf32>
    %265 = vector.extract_strided_slice %252 {offsets = [0, 256], sizes = [8, 128], strides = [1, 1]} : vector<8x512xf32> to vector<8x128xf32>
    %266 = math.tanh %265 : vector<8x128xf32>
    %267 = vector.extract_strided_slice %252 {offsets = [0, 384], sizes = [8, 128], strides = [1, 1]} : vector<8x512xf32> to vector<8x128xf32>
    %268 = arith.negf %267 : vector<8x128xf32>
    %269 = math.exp %268 : vector<8x128xf32>
    %cst_69 = arith.constant 1.000000e+00 : f32
    %270 = vector.broadcast %cst_69 : f32 to vector<8x128xf32>
    %271 = arith.addf %270, %269 : vector<8x128xf32>
    %272 = arith.divf %270, %271 : vector<8x128xf32>
    %273 = arith.mulf %264, %242 : vector<8x128xf32>
    %274 = arith.mulf %258, %266 : vector<8x128xf32>
    %275 = arith.addf %273, %274 : vector<8x128xf32>
    %276 = math.tanh %275 : vector<8x128xf32>
    %277 = arith.mulf %272, %276 : vector<8x128xf32>
    %278 = arith.index_cast %248 : i32 to index
    %c0_70 = arith.constant 0 : index
    %279 = vector.load %arg12[%278, %c0_70] : memref<64x128xf32, #tpu.memory_space<vmem>>, vector<8x128xf32>
    tpu.vector_store %arg12[%278, %c0_70], %277 {strides = array<i32>} : memref<64x128xf32, #tpu.memory_space<vmem>>, vector<8x128xf32>,
    %c8_i32_71 = arith.constant 8 : i32
    %c1_i32_72 = arith.constant 1 : i32
    %280 = arith.cmpi eq, %arg0, %c1_i32_72 : i32
    %281 = arith.extui %280 : i1 to i32
    %c0_i32_73 = arith.constant 0 : i32
    %282 = arith.cmpi ne, %281, %c0_i32_73 : i32
    scf.if %282 {
      %c0_74 = arith.constant 0 : index
      %c0_75 = arith.constant 0 : index
      %283 = vector.load %arg12[%c0_74, %c0_75] : memref<64x128xf32, #tpu.memory_space<vmem>>, vector<64x128xf32>
      %c0_76 = arith.constant 0 : index
      %c0_77 = arith.constant 0 : index
      %284 = vector.load %arg9[%c0_76, %c0_77] : memref<128x128xf32, #tpu.memory_space<vmem>>, vector<128x128xf32>
      %cst_78 = arith.constant dense<0.000000e+00> : vector<64x128xf32>
      %285 = tpu.matmul %283, %284, %cst_78 {dimension_numbers = #tpu.dot_dimension_numbers<[1], [0], [0], [1], [0, 0, 1, 1], [], []>} : vector<64x128xf32>, vector<128x128xf32>, vector<64x128xf32> -> vector<64x128xf32>
      %c0_79 = arith.constant 0 : index
      %c0_80 = arith.constant 0 : index
      %286 = vector.load %arg10[%c0_79, %c0_80] : memref<1x128xf32, #tpu.memory_space<vmem>>, vector<1x128xf32>
      %287 = vector.broadcast %286 : vector<1x128xf32> to vector<64x128xf32>
      %288 = arith.addf %285, %287 : vector<64x128xf32>
      %289 = math.tanh %288 : vector<64x128xf32>
      %c0_81 = arith.constant 0 : index
      %c0_82 = arith.constant 0 : index
      %290 = vector.load %arg11[%c0_81, %c0_82] : memref<64x128xf32, #tpu.memory_space<vmem>>, vector<64x128xf32>
      tpu.vector_store %arg11[%c0_81, %c0_82], %289 {strides = array<i32>} : memref<64x128xf32, #tpu.memory_space<vmem>>, vector<64x128xf32>,
    } else {
    }
    return
  }
  func.func @transform_0(%arg0: i32) -> (i32, i32) {
    %c0_i32 = arith.constant 0 : i32
    %c0_i32_0 = arith.constant 0 : i32
    %c0_i32_1 = arith.constant 0 : i32
    return %c0_i32, %c0_i32_0 : i32, i32
  }
  func.func @transform_1(%arg0: i32) -> (i32, i32) {
    %c0_i32 = arith.constant 0 : i32
    %c0_i32_0 = arith.constant 0 : i32
    %c0_i32_1 = arith.constant 0 : i32
    return %c0_i32, %c0_i32_0 : i32, i32
  }
  func.func @transform_2(%arg0: i32) -> (i32, i32) {
    %c0_i32 = arith.constant 0 : i32
    %c0_i32_0 = arith.constant 0 : i32
    %c0_i32_1 = arith.constant 0 : i32
    return %c0_i32, %c0_i32_0 : i32, i32
  }
  func.func @transform_3(%arg0: i32) -> (i32, i32) {
    %c0_i32 = arith.constant 0 : i32
    %c0_i32_0 = arith.constant 0 : i32
    %c0_i32_1 = arith.constant 0 : i32
    return %c0_i32, %c0_i32_0 : i32, i32
  }
  func.func @transform_4(%arg0: i32) -> (i32, i32) {
    %c0_i32 = arith.constant 0 : i32
    %c0_i32_0 = arith.constant 0 : i32
    %c0_i32_1 = arith.constant 0 : i32
    return %c0_i32, %c0_i32_0 : i32, i32
  }
  func.func @transform_5(%arg0: i32) -> (i32, i32, i32) {
    %c0_i32 = arith.constant 0 : i32
    %c0_i32_0 = arith.constant 0 : i32
    %c0_i32_1 = arith.constant 0 : i32
    return %arg0, %c0_i32, %c0_i32_0 : i32, i32, i32
  }
  func.func @transform_6(%arg0: i32) -> (i32, i32, i32) {
    %c0_i32 = arith.constant 0 : i32
    %c0_i32_0 = arith.constant 0 : i32
    %c0_i32_1 = arith.constant 0 : i32
    return %arg0, %c0_i32, %c0_i32_0 : i32, i32, i32
  }
  func.func @transform_7(%arg0: i32) -> (i32, i32, i32) {
    %c0_i32 = arith.constant 0 : i32
    %c0_i32_0 = arith.constant 0 : i32
    %c0_i32_1 = arith.constant 0 : i32
    return %arg0, %c0_i32, %c0_i32_0 : i32, i32, i32
  }
  func.func @transform_8(%arg0: i32) -> (i32, i32) {
    %c0_i32 = arith.constant 0 : i32
    %c0_i32_0 = arith.constant 0 : i32
    %c0_i32_1 = arith.constant 0 : i32
    return %c0_i32, %c0_i32_0 : i32, i32
  }
  func.func @transform_9(%arg0: i32) -> (i32, i32) {
    %c0_i32 = arith.constant 0 : i32
    %c0_i32_0 = arith.constant 0 : i32
    %c0_i32_1 = arith.constant 0 : i32
    return %c0_i32, %c0_i32_0 : i32, i32
  }
  func.func @transform_10(%arg0: i32) -> (i32, i32) {
    %c0_i32 = arith.constant 0 : i32
    %c0_i32_0 = arith.constant 0 : i32
    %c0_i32_1 = arith.constant 0 : i32
    return %c0_i32, %c0_i32_0 : i32, i32
  }
}

</mosaic_0001>

<bundles_post_ra>
// kernel: tpu_custom_call.1
= control target key start
LH: loop header
LB: loop body
LE: loop exit
PB: predicated region body
PF: predicated region fallthrough
CT: control target
= control target key end

     0   :  { %s5079_s0 = inlined_call_operand.vmem [shape: f32[64,16], index: 0, kind: input, shape index: {}]   ;;  %s5080_s1 = inlined_call_operand.vmem [shape: f32[16,128], index: 1, kind: input, shape index: {}]   ;;  %s5081_s2 = inlined_call_operand.vmem [shape: f32[1,128], index: 2, kind: input, shape index: {}]   ;;  %s5082_s3 = inlined_call_operand.vmem [shape: f32[1,128], index: 3, kind: input, shape index: {}]   ;;  %s5083_s4 = inlined_call_operand.vmem [shape: f32[1,128], index: 4, kind: input, shape index: {}]   ;;  %s5084_s5 = inlined_call_operand.hbm [shape: f32[2,128,512], index: 5, kind: input, shape index: {}]   ;;  %s5085_s6 = inlined_call_operand.hbm [shape: f32[2,128,512], index: 6, kind: input, shape index: {}]   ;;  %s5086_s7 = inlined_call_operand.vmem [shape: f32[2,1,512], index: 7, kind: input, shape index: {}]   ;;  %s5087_s8 = inlined_call_operand.hbm [shape: f32[128,128], index: 8, kind: input, shape index: {}]   ;;  %s5088_s9 = inlined_call_operand.vmem [shape: f32[1,128], index: 9, kind: input, shape index: {}]   ;;  %s5089_s10 = inlined_call_operand.hbm [shape: f32[64,128], index: 10, kind: output, shape index: {}]  }
   0x1   :  { %5095 = sst [smem:[#allocation17_spill]] %s5084_s5 }
   0x2   :  { %5096 = sst [smem:[#allocation18_spill]] %s5087_s8 }
   0x3   :  { %15 = vsyncpa [#allocation5], 0 }
   0x4   :  { %17 = vsyncpa [#allocation5 + $0x1], 0 }
   0x5   :  { %18 = vsyncpa [#allocation8], 0 }
   0x6   :  { %20 = vsyncpa [#allocation8 + $0x1], 0 }
   0x7   :  { %21 = vsyncpa [#allocation6], 0  ;;  %s4215_s13 = smov 0   ;;  %s4217_s14 = smov 0  }
   0x8   :  { %s4219_s15 = smov 0   ;;  %s4221_s16 = smov 0  }
   0x9 LB: > { %s4234_s17 = sadd.s32 4294967295, %s4147_s16   ;;  %p152_p0 = scmp.ne.s32.totalorder %s4139_s14, %s4135_s13  ;;  %s4147_s16 = sphi %s4221_s16, %s5114_s16   ;;  %s4143_s15 = sphi %s4219_s15, %s5118_s15   ;;  %s4139_s14 = sphi %s4217_s14, %s5117_s14   ;;  %s4135_s13 = sphi %s4215_s13, %s5116_s13  }
   0xa   : > { %p5090_p1 = scmp.eq.s32.totalorder %s4234_s17, 0  ;;  %p2912_p2 = scmp.ge.s32.totalorder %s4147_s16, 1 }
   0xb   : > { %p278_p3 = scmp.lt.s32.totalorder %s4147_s16, 3  ;;  %s4149_s20 = smov [#allocation9]  }
   0xc   : > { %p4243_p5 = por %p5090_p1, %p152_p0  ;;  %s305_s21 = sshll.u32 %s4149_s20, 4  ;;  %s306_s21 = int_to_ptr.vmem [resolvable:$true] %s305_s21 }
   0xd   : > { %p4247_p6 = pnand %p2912_p2, %p278_p3  ;;  %s4260_s23 = sadd.s32 1, %s4147_s16  }
   0xe   : > { %s5097_s18 = scalar_select %p4243_p5, 1, 0 }
   0xf   : > { %s5098_s19 = scalar_select %p4247_p6, 1, 0 }
  0x10   : > { %p3768_p7 = pneg %p4247_p6  ;;  %5100 = sst [smem:[#allocation15_spill]] %s4260_s23 }
  0x11   : > { %s139_s24 = sadd.s32 1, %s4143_s15  ;;  %s136_s25 = ssub.s32 %s4147_s16, %s4260_s23 }
  0x12   : > { %p4255_p8 = pnand %p3768_p7, %p5090_p1  ;;  %s5101_s8 = sld [smem:[#allocation18_spill]] }
  0x14   : > { %p3989_p10 = pneg %p4255_p8 }
  0x18   : > { %s3987_s28 = scalar_lea.hbm %s5101_s8, 2048 }
  0x19   : > { %p3988_p9 = scmp.ne.s32.totalorder %s5101_s8, %s3987_s28  ;;  %p3994_p13 = scmp.lt.u32.totalorder %s3987_s28, %s5101_s8 }
  0x1b   : > { %p3990_p11 = pnand %p3989_p10, %p3988_p9 }
  0x1d   : > { %p3991_p12 = pneg %p3990_p11 }
  0x1f   : > { %p3996_p0 = pnand %p3994_p13, %p3991_p12 }
  0x21   : > { %3999 = shalt.err (!%p3996_p0)
}
  0x22   : > { %s4000_s13 = scalar_lea.vmem %s306_s21, 2048  ;;  %p4008_p4 = scmp.lt.s32.totalorder %s306_s21, %s306_s21 }
  0x23   : > { %p4001_p2 = scmp.ne.s32.totalorder %s306_s21, %s4000_s13  ;;  %p4009_p1 = scmp.lt.s32.totalorder %s4000_s13, %s4000_s13 }
  0x25   : > { %p4003_p3 = pnand %p4001_p2, %p3989_p10  ;;  %p4010_p5 = por %p4009_p1, %p4008_p4 }
  0x27   : > { %p4004_p7 = pneg %p4003_p3 }
  0x29   : > { %p4011_p6 = pnand %p4010_p5, %p4004_p7 }
  0x2b   : > { %4014 = shalt.err (!%p4011_p6)
}
  0x2c   : > { %s4150_s20 = smov 128   ;;  %s4151_s26 = smov 8  }
  0x2d   : > { %3771 = dma.hbm_to_vmem [thread:$0]  (!%p4255_p8), %s5101_s8, 2048, %s306_s21, [#allocation8], %s4150_s20, %s4150_s20, %s4151_s26  }
  0x2e   : > { %p137_p9 = scmp.eq.s32.totalorder %s136_s25, 0  ;;  %p146_p1 = scmp.ne.s32.totalorder %s4143_s15, %s4139_s14 }
  0x2f   : > { %p147_p4 = scmp.eq.s32.totalorder %s4147_s16, 0  ;;  %p3780_p5 = scmp.lt.s32.totalorder %s4147_s16, 2 }
  0x30   : > { %s4286_s29 = scalar_select %p137_p9, %s4143_s15, %s139_s24  }
  0x31   : > { %p148_p6 = por %p147_p4, %p146_p1  ;;  %s322_s30 = sand.u32 1, %s4143_s15  }
  0x32   : > { %5102 = sst [smem:[#allocation16_spill]] %s4286_s29  ;;  %s4289_s11 = sshll.u32 %s322_s30, 9 }
  0x33   : > { %s2966_s12 = sshll.u32 %s4147_s16, 13  ;;  %s5103_s5 = sld [smem:[#allocation17_spill]] }
  0x34   : > { %s326_s21 = scalar_lea.vmem [#allocation4], %s4289_s11  ;;  %p4302_p8 = pnand %p3780_p5, %p148_p6 }
  0x35   : > { %s333_s25 = sshll.u32 %s326_s21, 4  ;;  %s4306_s20 = scalar_lea.sflag [#allocation5], %s322_s30  ;;  %s4300_s25 = int_to_ptr.vmem [resolvable:$true] %s333_s25 }
  0x36   : > { %p4017_p11 = pneg %p4302_p8 }
  0x39   : > { %s4297_s22 = scalar_lea.hbm %s5103_s5, %s2966_s12  ;;  %s4020_s28 = scalar_lea.hbm %s5103_s5, 16384 }
  0x3a   : > { %s4015_s26 = scalar_lea.hbm %s4297_s22, 8192  ;;  %p4021_p0 = scmp.lt.u32.totalorder %s4297_s22, %s5103_s5 }
  0x3b   : > { %p4016_p10 = scmp.ne.s32.totalorder %s4297_s22, %s4015_s26  ;;  %p4022_p2 = scmp.lt.u32.totalorder %s4020_s28, %s4015_s26 }
  0x3c   : > { %p4024_p7 = scmp.lt.u32.totalorder %s4015_s26, %s4297_s22 }
  0x3d   : > { %p4018_p12 = pnand %p4017_p11, %p4016_p10  ;;  %p4023_p3 = por %p4022_p2, %p4021_p0 }
  0x3f   : > { %p4019_p13 = pneg %p4018_p12  ;;  %p4025_p9 = por %p4024_p7, %p4023_p3 }
  0x41   : > { %p4026_p1 = pnand %p4025_p9, %p4019_p13 }
  0x43   : > { %4029 = shalt.err (!%p4026_p1)
}
  0x44   : > { %s4030_s30 = scalar_lea.vmem %s4300_s25, 8192  ;;  %s4152_s23 = smov [#allocation4]  }
  0x45   : > { %p4031_p4 = scmp.ne.s32.totalorder %s4300_s25, %s4030_s30  ;;  %s4035_s27 = sshll.u32 %s4152_s23, 4  ;;  %s4036_s27 = int_to_ptr.vmem [resolvable:$false] %s4035_s27 }
  0x46   : > { %s4037_s13 = scalar_lea.vmem %s4036_s27, 16384  ;;  %p4038_p10 = scmp.lt.s32.totalorder %s4300_s25, %s4036_s27 }
  0x47   : > { %p4033_p5 = pnand %p4031_p4, %p4017_p11  ;;  %p4039_p12 = scmp.lt.s32.totalorder %s4037_s13, %s4030_s30 }
  0x49   : > { %p4034_p6 = pneg %p4033_p5  ;;  %p4040_p0 = por %p4039_p12, %p4038_p10 }
  0x4b   : > { %p4041_p2 = pnand %p4040_p0, %p4034_p6 }
  0x4d   : > { %4044 = shalt.err (!%p4041_p2)
}
  0x4e   : > { %s4153_s26 = smov 512   ;;  %s4154_s28 = smov 32  }
  0x4f   : > { %3775 = dma.hbm_to_vmem [thread:$0]  (!%p4302_p8), %s4297_s22, 8192, %s4300_s25, %s4306_s20, %s4153_s26, %s4153_s26, %s4154_s28  }
  0x50   : > { %s4342_s23 = scalar_lea.hbm %s5085_s6, %s2966_s12  ;;  %s347_s27 = scalar_lea.vmem [#allocation7], %s4289_s11 }
  0x51   : > { %s354_s13 = sshll.u32 %s347_s27, 4  ;;  %s343_s5 = sand.u32 1, %s4147_s16   ;;  %s4345_s13 = int_to_ptr.vmem [resolvable:$true] %s354_s13 }
  0x52   : > { %s4348_s8 = scalar_lea.sflag [#allocation8], %s343_s5  ;;  %s4045_s29 = scalar_lea.hbm %s4342_s23, 8192 }
  0x53   : > { %p4046_p13 = scmp.ne.s32.totalorder %s4342_s23, %s4045_s29  ;;  %s4050_s25 = scalar_lea.hbm %s5085_s6, 16384 }
  0x54   : > { %p4051_p9 = scmp.lt.u32.totalorder %s4342_s23, %s5085_s6  ;;  %p4052_p1 = scmp.lt.u32.totalorder %s4050_s25, %s4045_s29 }
  0x55   : > { %p4048_p3 = pnand %p4046_p13, %p4017_p11  ;;  %p4054_p5 = scmp.lt.u32.totalorder %s4045_s29, %s4342_s23 }
  0x56   : > { %p4053_p4 = por %p4052_p1, %p4051_p9 }
  0x57   : > { %p4049_p7 = pneg %p4048_p3 }
  0x58   : > { %p4055_p6 = por %p4054_p5, %p4053_p4 }
  0x5a   : > { %p4056_p10 = pnand %p4055_p6, %p4049_p7 }
  0x5c   : > { %4059 = shalt.err (!%p4056_p10)
}
  0x5d   : > { %s4060_s5 = scalar_lea.vmem %s4345_s13, 8192  ;;  %s4155_s16 = smov [#allocation7]  }
  0x5e   : > { %p4061_p12 = scmp.ne.s32.totalorder %s4345_s13, %s4060_s5  ;;  %s4065_s11 = sshll.u32 %s4155_s16, 4  ;;  %s4066_s11 = int_to_ptr.vmem [resolvable:$false] %s4065_s11 }
  0x5f   : > { %s4067_s30 = scalar_lea.vmem %s4066_s11, 16384  ;;  %p4068_p13 = scmp.lt.s32.totalorder %s4345_s13, %s4066_s11 }
  0x60   : > { %p4063_p0 = pnand %p4061_p12, %p4017_p11  ;;  %p4069_p3 = scmp.lt.s32.totalorder %s4067_s30, %s4060_s5 }
  0x62   : > { %p4064_p2 = pneg %p4063_p0  ;;  %p4070_p9 = por %p4069_p3, %p4068_p13 }
  0x64   : > { %p4071_p1 = pnand %p4070_p9, %p4064_p2 }
  0x66   : > { %4074 = shalt.err (!%p4071_p1)
}
  0x67   : > { %3778 = dma.hbm_to_vmem [thread:$0]  (!%p4302_p8), %s4342_s23, 8192, %s4345_s13, %s4348_s8, %s4153_s26, %s4153_s26, %s4154_s28  }
  0x68   : > { %p5105_p11 = scmp.ne.s32.totalorder %s5098_s19, 0 }
  0x69   : > { %s375_s29 = sand.u32 (!%p5105_p11), 1, %s4139_s14   ;;  %p5106_p7 = scmp.ne.s32.totalorder (!%p5105_p11), %s5097_s18, 0 }
  0x6a   : > { %373 = sbr.rel (%p5105_p11) target bundleno = 2811 (0xafb), region = 60  ;;  %s2922_s27 = sshll.u32 (!%p5105_p11), %s375_s29, 9 }
  0x6b   : > { %s376_s22 = scalar_lea.sflag (!%p5105_p11), [#allocation5], %s375_s29  ;;  %s4380_s12 = scalar_lea.vmem (!%p5105_p11), [#allocation4], %s2922_s27 }
  0x71   : > { %4118 = dma.done.wait (%p5106_p7), %s376_s22, 8192  }
  0x72   : > { %4120 = vsyncadd (%p5106_p7), %s376_s22, 4294959104  ;;  %s384_s24 = sand.u32 1, %s4234_s17   ;;  %s4387_s8 = scalar_lea.vmem [#allocation7], %s2922_s27 }
  0x73   : > { %s385_s25 = scalar_lea.sflag [#allocation8], %s384_s24 }
  0x74   : > { %4122 = dma.done.wait (%p5106_p7), %s385_s25, 8192  }
  0x75   : > { %4124 = vsyncadd (%p5106_p7), %s385_s25, 4294959104  ;;  %p5107_p8 = scmp.eq.s32.totalorder %s4234_s17, 0 }
  0x77   : > { %4126 = dma.done.wait (%p5107_p8), [#allocation8], 2048   ;;  %p5108_p4 = pmov %p5107_p8 }
  0x78   : > { %p433_p5 = scmp.lt.s32.totalorder %s4234_s17, 1  ;;  %p5109_p6 = scmp.ne.s32.totalorder %s4234_s17, 0 }
  0x79   : > { %4128 = vsyncadd (%p5108_p4), [#allocation8], 4294965248  ;;  %v449_v0 = vld [vmem:[%s5080_s1] sm:$0xff] (!%p5109_p6)  ;;  %v450_v1 = vld [vmem:[%s5080_s1 + $0x8] sm:$0xff] (!%p5109_p6)  ;;  %vm458_vm0 = vcmask (!%p5109_p6), 130048   ;;  %v596_v11 = vlaneseq (!%p5109_p6) }
  0x7a   : > { %s434_s19 = scalar_select %p433_p5, %s4234_s17, 1 }
  0x7b   : > { %440 = sbr.rel (%p5109_p6) target bundleno = 417 (0x1a1), region = 76  ;;  %v441_v2 = vld [vmem:[%s5079_s0] sm:$0xff] (!%p5109_p6)  ;;  %v3062_v3 = vpack.c.bf16 (!%p5109_p6), %v450_v1, %v449_v0  ;;  %v442_v5 = vld [vmem:[%s5079_s0 + $0x8] sm:$0xff] (!%p5109_p6)  ;;  %v443_v7 = vld [vmem:[%s5079_s0 + $0x10] sm:$0xff] (!%p5109_p6)  ;;  %v4447_v13 = vshrl.u32 (!%p5109_p6), %v596_v11, 7 }
  0x7c   : > { %s2925_s26 = sshll.u32 %s434_s19, 2  ;;  %3006 = vmatprep.mubr.msk.f32.mxu0 (!%p5109_p6), %vm458_vm0, %v441_v2  ;;  %v445_v4 = vld [vmem:[%s5079_s0 + $0x20] sm:$0xff] (!%p5109_p6)  ;;  %v446_v6 = vld [vmem:[%s5079_s0 + $0x28] sm:$0xff] (!%p5109_p6)  ;;  %v447_v8 = vld [vmem:[%s5079_s0 + $0x30] sm:$0xff] (!%p5109_p6) }
  0x7d   : > { %s4402_s13 = scalar_lea.vmem %s5086_s7, %s2925_s26  ;;  %3063 = vmatprep.subr.bf16.mxu0 (!%p5109_p6), %v3062_v3  ;;  %3674 = vmatprep.subr.bf16.mxu1 (!%p5109_p6), %v3062_v3  ;;  %v444_v9 = vld [vmem:[%s5079_s0 + $0x18] sm:$0xff] (!%p5109_p6)  ;;  %v2927_v12 = vld [vmem:[%s5081_s2] ss:$0 sm:$0xff] (!%p5109_p6)  ;;  %v598_v21 = vadd.s32 (!%p5109_p6), 8, %v4447_v13  ;;  %v600_v25 = vadd.s32 (!%p5109_p6), 24, %v4447_v13  ;;  %v599_v30 = vadd.s32 (!%p5109_p6), 16, %v4447_v13 }
  0x7e   : > { %3065 = vmatpush3.bf16.msra.mxu0 (!%p5109_p6), %v3062_v3  ;;  %3675 = vmatpush3.bf16.msra.mxu1 (!%p5109_p6), %v3062_v3  ;;  %v448_v10 = vld [vmem:[%s5079_s0 + $0x38] sm:$0xff] (!%p5109_p6)  ;;  %v601_v33 = vadd.s32 (!%p5109_p6), 32, %v4447_v13  ;;  %v609_v34 = vand.u32 (!%p5109_p6), 7, %v4447_v13  ;;  %v602_v38 = vadd.s32 (!%p5109_p6), 40, %v4447_v13  ;;  %v603_v40 = vadd.s32 (!%p5109_p6), 48, %v4447_v13 }
  0x7f   : > { %3012 = vmatprep.mubr.msk.f32.mxu1 (!%p5109_p6), %vm458_vm0, %v445_v4  ;;  %v616_v32 = vand.u32 (!%p5109_p6), 7, %v598_v21  ;;  %v630_v35 = vand.u32 (!%p5109_p6), 7, %v600_v25  ;;  %v623_v36 = vand.u32 (!%p5109_p6), 7, %v599_v30  ;;  %v604_v52 = vadd.s32 (!%p5109_p6), 56, %v4447_v13  ;;  %v759_v45 = vld [vmem:[%s5083_s4] sm:$0x1] (!%p5109_p6) }
  0x80   : > { %v637_v39 = vand.u32 (!%p5109_p6), 7, %v601_v33  ;;  %vm701_vm2 = vcmp.lt.s32.totalorder (!%p5109_p6), %v609_v34, 2  ;;  %v644_v48 = vand.u32 (!%p5109_p6), 7, %v602_v38  ;;  %v651_v53 = vand.u32 (!%p5109_p6), 7, %v603_v40 }
  0x81   : > { %3007 = vmatmul.mubr.msk.f32.vlgmr.msra.gmra.mrb[0].mxu0 (!%p5109_p6), %vm458_vm0, %v442_v5  ;;  %3013 = vmatmul.mubr.msk.f32.vlgmr.msra.gmra.mrb[0].mxu1 (!%p5109_p6), %vm458_vm0, %v446_v6  ;;  %vm702_vm1 = vcmp.lt.s32.totalorder (!%p5109_p6), %v616_v32, 2  ;;  %vm4461_vm3 = vcmp.lt.s32.totalorder (!%p5109_p6), %v630_v35, 2  ;;  %vm4465_vm4 = vcmp.lt.s32.totalorder (!%p5109_p6), %v623_v36, 2  ;;  %v658_v0 = vand.u32 (!%p5109_p6), 7, %v604_v52 }
  0x82   : > { %3009 = vmatprep.mubr.msk.f32.mxu0 %vm458_vm0, %v443_v7  ;;  %3015 = vmatprep.mubr.msk.f32.mxu1 %vm458_vm0, %v447_v8  ;;  %vm705_vm5 = vcmp.lt.s32.totalorder %v637_v39, 2  ;;  %vm706_vm6 = vcmp.lt.s32.totalorder %v644_v48, 2  ;;  %vm707_vm7 = vcmp.lt.s32.totalorder %v651_v53, 2  ;;  %v755_v39 = vld [vmem:[%s5082_s3] sm:$0x1]  ;;  %v765_v40 = vsub.s32 0, %v4447_v13 }
  0x83   : > { %vm708_vm8 = vcmp.lt.s32.totalorder %v658_v0, 2 }
  0x85   : > { %3010 = vmatmul.mubr.msk.f32.gmra.mrb[2].mxu0 %vm458_vm0, %v444_v9  ;;  %3016 = vmatmul.mubr.msk.f32.gmra.mrb[2].mxu1 %vm458_vm0, %v448_v10 }
 0x154   : > { %v3008_v14 = vpop.f32.mrb[0].mxu0  ;;  %v3014_v15 = vpop.f32.mrb[0].mxu1 }
 0x155   : > { %v555_v16 = vadd.f32 %v3008_v14, %v2927_v12  ;;  %v549_v17 = vpop.f32.mrb[1].mxu0  ;;  %v569_v18 = vpop.f32.mrb[1].mxu1  ;;  %v575_v27 = vadd.f32 %v3014_v15, %v2927_v12 }
 0x156   : > { %v550_v19 = vadd.f32 %v2927_v12, %v549_v17  ;;  %v570_v20 = vadd.f32 %v2927_v12, %v569_v18 }
 0x157   : > { %3825 = vtanh.f32 %v555_v16 }
 0x158   : > { %3827 = vtanh.f32 %v550_v19  ;;  %v3011_v22 = vpop.f32.mrb[2].mxu0  ;;  %v3017_v23 = vpop.f32.mrb[2].mxu1 }
 0x159   : > { %v565_v24 = vadd.f32 %v3011_v22, %v2927_v12  ;;  %v559_v26 = vpop.f32.mrb[3].mxu0  ;;  %v579_v28 = vpop.f32.mrb[3].mxu1  ;;  %3829 = vtanh.f32 %v570_v20  ;;  %v585_v37 = vadd.f32 %v3017_v23, %v2927_v12 }
 0x15a   : > { %v560_v29 = vadd.f32 %v2927_v12, %v559_v26  ;;  %v580_v31 = vadd.f32 %v2927_v12, %v579_v28 }
 0x15b   : > { %3831 = vtanh.f32 %v565_v24 }
 0x15c   : > { %3833 = vtanh.f32 %v560_v29 }
 0x15d   : > { %3835 = vtanh.f32 %v575_v27 }
 0x15e   : > { %3837 = vtanh.f32 %v580_v31 }
 0x15f   : > { %3839 = vtanh.f32 %v585_v37 }
 0x161   : > { %v4456_v41 = vpop.eup %3825 }
 0x162   : > { %v4458_v42 = vpop.eup %3827  ;;  %v710_v43 = vsel %vm702_vm1, %v4456_v41, 0.0 }
 0x163   : > { %v732_v46 = vmul.f32 %v710_v43, %v710_v43  ;;  %v709_v47 = vsel %vm701_vm2, %v4458_v42, 0.0  ;;  %v4470_v49 = vpop.eup %3829 }
 0x164   : > { %v717_v50 = vadd.f32 %v710_v43, %v709_v47  ;;  %v731_v51 = vmul.f32 %v709_v47, %v709_v47  ;;  %v713_v60 = vsel %vm705_vm5, %v4470_v49, 0.0 }
 0x165   : > { %v4473_v54 = vpop.eup %3831  ;;  %v735_v4 = vmul.f32 %v713_v60, %v713_v60 }
 0x166   : > { %v3834_v55 = vpop.eup %3833  ;;  %v739_v56 = vadd.f32 %v732_v46, %v731_v51  ;;  %v712_v58 = vsel %vm4461_vm3, %v4473_v54, 0.0 }
 0x167   : > { %v3836_v57 = vpop.eup %3835  ;;  %v711_v59 = vsel %vm4465_vm4, %v3834_v55, 0.0  ;;  %v734_v1 = vmul.f32 %v712_v58, %v712_v58 }
 0x168   : > { %v3838_v61 = vpop.eup %3837  ;;  %v718_v62 = vadd.f32 %v717_v50, %v711_v59  ;;  %v733_v63 = vmul.f32 %v711_v59, %v711_v59  ;;  %v714_v5 = vsel %vm706_vm6, %v3836_v57, 0.0 }
 0x169   : > { %v715_v6 = vsel %vm707_vm7, %v3838_v61, 0.0  ;;  %v3840_v7 = vpop.eup %3839  ;;  %v736_v10 = vmul.f32 %v714_v5, %v714_v5 }
 0x16a   : > { %v740_v2 = vadd.f32 %v739_v56, %v733_v63  ;;  %v719_v3 = vadd.f32 %v718_v62, %v712_v58  ;;  %v737_v14 = vmul.f32 %v715_v6, %v715_v6  ;;  %v716_v15 = vsel %vm708_vm8, %v3840_v7, 0.0 }
 0x16b   : > { %v738_v18 = vmul.f32 %v716_v15, %v716_v15 }
 0x16c   : > { %v720_v8 = vadd.f32 %v719_v3, %v713_v60  ;;  %v741_v9 = vadd.f32 %v740_v2, %v734_v1 }
 0x16e   : > { %v742_v11 = vadd.f32 %v741_v9, %v735_v4  ;;  %v721_v12 = vadd.f32 %v720_v8, %v714_v5 }
 0x170   : > { %v722_v16 = vadd.f32 %v721_v12, %v715_v6  ;;  %v743_v17 = vadd.f32 %v742_v11, %v736_v10 }
 0x172   : > { %v723_v19 = vadd.f32 %v722_v16, %v716_v15  ;;  %v744_v20 = vadd.f32 %v743_v17, %v737_v14 }
 0x174   : > { %v724_v21 = vrot.slane %v723_v19, 4  ;;  %v745_v22 = vadd.f32 %v744_v20, %v738_v18 }
 0x176   : > { %v725_v23 = vadd.f32 %v724_v21, %v723_v19  ;;  %v746_v24 = vrot.slane %v745_v22, 4 }
 0x178   : > { %v726_v25 = vrot.slane %v725_v23, 2  ;;  %v747_v26 = vadd.f32 %v746_v24, %v745_v22 }
 0x17a   : > { %v727_v27 = vadd.f32 %v726_v25, %v725_v23  ;;  %v748_v28 = vrot.slane %v747_v26, 2 }
 0x17c   : > { %v728_v29 = vrot.slane %v727_v27, 1  ;;  %v749_v30 = vadd.f32 %v748_v28, %v747_v26 }
 0x17e   : > { %v729_v31 = vadd.f32 %v728_v29, %v727_v27  ;;  %v750_v32 = vrot.slane %v749_v30, 1 }
 0x180   : > { %v730_v33 = vmul.f32 0.0625, %v729_v31  ;;  %v751_v34 = vadd.f32 %v750_v32, %v749_v30 }
 0x182   : > { %v752_v35 = vmul.f32 0.0625, %v751_v34  ;;  %v753_v36 = vmul.f32 %v730_v33, %v730_v33 }
 0x184   : > { %v754_v37 = vsub.f32 %v752_v35, %v753_v36 }
 0x186   : > { %v756_v38 = vadd.f32 1e-05, %v754_v37 }
 0x188   : > { %3841 = vrsqrt.f32 %v756_v38 }
 0x192   : > { %v3842_v43 = vpop.eup %3841 }
 0x193   : > { %v758_v44 = vmul.f32 %v3842_v43, %v755_v39 }
 0x195   : > { %v760_v46 = vmul.f32 %v758_v44, %v730_v33  ;;  %v766_v47 = vrot.slane %v758_v44, %v765_v40 }
 0x197   : > { %v761_v48 = vsub.f32 %v759_v45, %v760_v46  ;;  %v768_v50 = vmul.f32 %v4458_v42, %v766_v47  ;;  %v769_v51 = vmul.f32 %v4456_v41, %v766_v47  ;;  %v770_v52 = vmul.f32 %v3834_v55, %v766_v47 }
 0x198   : > { %v771_v53 = vmul.f32 %v4473_v54, %v766_v47  ;;  %v772_v56 = vmul.f32 %v4470_v49, %v766_v47  ;;  %v773_v58 = vmul.f32 %v3836_v57, %v766_v47  ;;  %v774_v13 = vmul.f32 %v3838_v61, %v766_v47 }
 0x199   : > { %v775_v59 = vmul.f32 %v3840_v7, %v766_v47  ;;  %v780_v60 = vrot.slane %v761_v48, %v765_v40 }
 0x19b   : > { %v782_v62 = vadd.f32 %v780_v60, %v768_v50  ;;  %v783_v63 = vadd.f32 %v780_v60, %v769_v51  ;;  %v784_v0 = vadd.f32 %v780_v60, %v770_v52  ;;  %v785_v1 = vadd.f32 %v780_v60, %v771_v53 }
 0x19c   : > { %v786_v2 = vadd.f32 %v780_v60, %v772_v56  ;;  %v787_v3 = vadd.f32 %v780_v60, %v773_v58  ;;  %v788_v4 = vadd.f32 %v780_v60, %v774_v13  ;;  %v789_v5 = vadd.f32 %v780_v60, %v775_v59 }
 0x19d   : > { %790 = vst [vmem:[#allocation2] sm:$0xff] %v782_v62  ;;  %791 = vst [vmem:[#allocation2 + $0x8] sm:$0xff] %v783_v63 }
 0x19e   : > { %792 = vst [vmem:[#allocation2 + $0x10] sm:$0xff] %v784_v0  ;;  %793 = vst [vmem:[#allocation2 + $0x18] sm:$0xff] %v785_v1 }
 0x19f   : > { %794 = vst [vmem:[#allocation2 + $0x20] sm:$0xff] %v786_v2  ;;  %795 = vst [vmem:[#allocation2 + $0x28] sm:$0xff] %v787_v3 }
 0x1a0   : > { %796 = vst [vmem:[#allocation2 + $0x30] sm:$0xff] %v788_v4  ;;  %797 = vst [vmem:[#allocation2 + $0x38] sm:$0xff] %v789_v5 }
 0x1a1 PF: > { %v807_v41 = vld [vmem:[%s4380_s12 + $0x8] sm:$0xff]  ;;  %v809_v49 = vld [vmem:[%s4380_s12 + $0x18] sm:$0xff]  ;;  %v806_v57 = vld [vmem:[%s4380_s12] sm:$0xff]  ;;  %v4156_v6 = vmov 0.0   ;;  %p2960_p10 = scmp.ne.s32.totalorder %s4234_s17, 1 }
 0x1a2   : > { %v811_v42 = vld [vmem:[%s4380_s12 + $0x28] sm:$0xff]  ;;  %v813_v55 = vld [vmem:[%s4380_s12 + $0x38] sm:$0xff]  ;;  %v810_v61 = vld [vmem:[%s4380_s12 + $0x20] sm:$0xff]  ;;  %956 = vmatprep.mubr.f32.mxu0 %v4156_v6  ;;  %1069 = vmatprep.mubr.f32.mxu1 %v4156_v6 }
 0x1a3   : > { %v3066_v54 = vpack.c.bf16 %v811_v42, %v807_v41  ;;  %v3098_v7 = vpack.c.bf16 %v813_v55, %v809_v49  ;;  %v3068_v8 = vpack.c.bf16 %v810_v61, %v806_v57  ;;  %v808_v9 = vld [vmem:[%s4380_s12 + $0x10] sm:$0xff]  ;;  %v815_v11 = vld [vmem:[%s4380_s12 + $0x48] sm:$0xff]  ;;  %v817_v15 = vld [vmem:[%s4380_s12 + $0x58] sm:$0xff] }
 0x1a4   : > { %v812_v10 = vld [vmem:[%s4380_s12 + $0x30] sm:$0xff]  ;;  %v819_v14 = vld [vmem:[%s4380_s12 + $0x68] sm:$0xff]  ;;  %v821_v16 = vld [vmem:[%s4380_s12 + $0x78] sm:$0xff] }
 0x1a5   : > { %3067 = vmatprep.subr.bf16.mxu0 %v3066_v54  ;;  %v3100_v12 = vpack.c.bf16 %v812_v10, %v808_v9  ;;  %3099 = vmatprep.subr.bf16.mxu1 %v3098_v7  ;;  %v3070_v17 = vpack.c.bf16 %v819_v14, %v815_v11  ;;  %v3102_v18 = vpack.c.bf16 %v821_v16, %v817_v15  ;;  %v814_v19 = vld [vmem:[%s4380_s12 + $0x40] sm:$0xff]  ;;  %v816_v21 = vld [vmem:[%s4380_s12 + $0x50] sm:$0xff]  ;;  %v823_v24 = vld [vmem:[%s4380_s12 + $0x88] sm:$0xff] }
 0x1a6   : > { %3069 = vmatpush1.bf16.msra.mxu0 %v3068_v8  ;;  %v818_v20 = vld [vmem:[%s4380_s12 + $0x60] sm:$0xff]  ;;  %v820_v23 = vld [vmem:[%s4380_s12 + $0x70] sm:$0xff]  ;;  %v827_v25 = vld [vmem:[%s4380_s12 + $0xa8] sm:$0xff] }
 0x1a7   : > { %3101 = vmatpush1.bf16.msra.mxu1 %v3100_v12  ;;  %v3072_v22 = vpack.c.bf16 %v818_v20, %v814_v19  ;;  %3071 = vmatprep.subr.bf16.mxu0 %v3070_v17  ;;  %v3104_v26 = vpack.c.bf16 %v820_v23, %v816_v21  ;;  %v3074_v27 = vpack.c.bf16 %v827_v25, %v823_v24  ;;  %v825_v28 = vld [vmem:[%s4380_s12 + $0x98] sm:$0xff]  ;;  %v822_v30 = vld [vmem:[%s4380_s12 + $0x80] sm:$0xff]  ;;  %v824_v33 = vld [vmem:[%s4380_s12 + $0x90] sm:$0xff] }
 0x1a8   : > { %3103 = vmatprep.subr.bf16.mxu1 %v3102_v18  ;;  %v829_v29 = vld [vmem:[%s4380_s12 + $0xb8] sm:$0xff]  ;;  %v826_v32 = vld [vmem:[%s4380_s12 + $0xa0] sm:$0xff]  ;;  %v828_v34 = vld [vmem:[%s4380_s12 + $0xb0] sm:$0xff] }
 0x1a9   : > { %v3106_v31 = vpack.c.bf16 %v829_v29, %v825_v28  ;;  %v3076_v35 = vpack.c.bf16 %v826_v32, %v822_v30  ;;  %v831_v36 = vld [vmem:[%s4380_s12 + $0xc8] sm:$0xff]  ;;  %v833_v38 = vld [vmem:[%s4380_s12 + $0xd8] sm:$0xff]  ;;  %v3108_v39 = vpack.c.bf16 %v828_v34, %v824_v33  ;;  %v830_v44 = vld [vmem:[%s4380_s12 + $0xc0] sm:$0xff] }
 0x1aa   : > { %3073 = vmatpush1.bf16.msra.mxu0 %v3072_v22  ;;  %v835_v37 = vld [vmem:[%s4380_s12 + $0xe8] sm:$0xff]  ;;  %v837_v43 = vld [vmem:[%s4380_s12 + $0xf8] sm:$0xff]  ;;  %v834_v45 = vld [vmem:[%s4380_s12 + $0xe0] sm:$0xff] }
 0x1ab   : > { %3105 = vmatpush1.bf16.msra.mxu1 %v3104_v26  ;;  %3075 = vmatprep.subr.bf16.mxu0 %v3074_v27  ;;  %v3078_v40 = vpack.c.bf16 %v835_v37, %v831_v36  ;;  %v3110_v46 = vpack.c.bf16 %v837_v43, %v833_v38  ;;  %v832_v47 = vld [vmem:[%s4380_s12 + $0xd0] sm:$0xff]  ;;  %v839_v50 = vld [vmem:[%s4380_s12 + $0x108] sm:$0xff]  ;;  %v841_v52 = vld [vmem:[%s4380_s12 + $0x118] sm:$0xff]  ;;  %v3080_v56 = vpack.c.bf16 %v834_v45, %v830_v44 }
 0x1ac   : > { %3107 = vmatprep.subr.bf16.mxu1 %v3106_v31  ;;  %v836_v48 = vld [vmem:[%s4380_s12 + $0xf0] sm:$0xff]  ;;  %v843_v51 = vld [vmem:[%s4380_s12 + $0x128] sm:$0xff]  ;;  %v845_v53 = vld [vmem:[%s4380_s12 + $0x138] sm:$0xff] }
 0x1ad   : > { %v3112_v58 = vpack.c.bf16 %v836_v48, %v832_v47  ;;  %v3082_v13 = vpack.c.bf16 %v843_v51, %v839_v50  ;;  %v838_v59 = vld [vmem:[%s4380_s12 + $0x100] sm:$0xff]  ;;  %v840_v62 = vld [vmem:[%s4380_s12 + $0x110] sm:$0xff]  ;;  %v3114_v63 = vpack.c.bf16 %v845_v53, %v841_v52  ;;  %v847_v1 = vld [vmem:[%s4380_s12 + $0x148] sm:$0xff] }
 0x1ae   : > { %3077 = vmatpush1.bf16.msra.mxu0 %v3076_v35  ;;  %v842_v60 = vld [vmem:[%s4380_s12 + $0x120] sm:$0xff]  ;;  %v844_v0 = vld [vmem:[%s4380_s12 + $0x130] sm:$0xff]  ;;  %v851_v2 = vld [vmem:[%s4380_s12 + $0x168] sm:$0xff] }
 0x1af   : > { %3109 = vmatpush1.bf16.msra.mxu1 %v3108_v39  ;;  %3079 = vmatprep.subr.bf16.mxu0 %v3078_v40  ;;  %v849_v3 = vld [vmem:[%s4380_s12 + $0x158] sm:$0xff]  ;;  %v3084_v5 = vpack.c.bf16 %v842_v60, %v838_v59  ;;  %v3116_v41 = vpack.c.bf16 %v844_v0, %v840_v62  ;;  %v3086_v42 = vpack.c.bf16 %v851_v2, %v847_v1  ;;  %v846_v49 = vld [vmem:[%s4380_s12 + $0x140] sm:$0xff]  ;;  %v848_v55 = vld [vmem:[%s4380_s12 + $0x150] sm:$0xff] }
 0x1b0   : > { %3111 = vmatprep.subr.bf16.mxu1 %v3110_v46  ;;  %v853_v4 = vld [vmem:[%s4380_s12 + $0x178] sm:$0xff]  ;;  %v850_v54 = vld [vmem:[%s4380_s12 + $0x160] sm:$0xff]  ;;  %v852_v61 = vld [vmem:[%s4380_s12 + $0x170] sm:$0xff] }
 0x1b1   : > { %v3118_v57 = vpack.c.bf16 %v853_v4, %v849_v3  ;;  %v855_v7 = vld [vmem:[%s4380_s12 + $0x188] sm:$0xff]  ;;  %v857_v9 = vld [vmem:[%s4380_s12 + $0x198] sm:$0xff]  ;;  %v3088_v11 = vpack.c.bf16 %v850_v54, %v846_v49  ;;  %v3120_v12 = vpack.c.bf16 %v852_v61, %v848_v55  ;;  %v854_v15 = vld [vmem:[%s4380_s12 + $0x180] sm:$0xff] }
 0x1b2   : > { %3081 = vmatpush1.bf16.msra.mxu0 %v3080_v56  ;;  %v859_v8 = vld [vmem:[%s4380_s12 + $0x1a8] sm:$0xff]  ;;  %v861_v10 = vld [vmem:[%s4380_s12 + $0x1b8] sm:$0xff]  ;;  %v858_v16 = vld [vmem:[%s4380_s12 + $0x1a0] sm:$0xff] }
 0x1b3   : > { %3113 = vmatpush1.bf16.msra.mxu1 %v3112_v58  ;;  %3083 = vmatprep.subr.bf16.mxu0 %v3082_v13  ;;  %v3090_v14 = vpack.c.bf16 %v859_v8, %v855_v7  ;;  %v856_v17 = vld [vmem:[%s4380_s12 + $0x190] sm:$0xff]  ;;  %v3122_v18 = vpack.c.bf16 %v861_v10, %v857_v9  ;;  %v863_v20 = vld [vmem:[%s4380_s12 + $0x1c8] sm:$0xff]  ;;  %v865_v22 = vld [vmem:[%s4380_s12 + $0x1d8] sm:$0xff]  ;;  %v3092_v24 = vpack.c.bf16 %v858_v16, %v854_v15 }
 0x1b4   : > { %3115 = vmatprep.subr.bf16.mxu1 %v3114_v63  ;;  %v860_v19 = vld [vmem:[%s4380_s12 + $0x1b0] sm:$0xff]  ;;  %v867_v21 = vld [vmem:[%s4380_s12 + $0x1e8] sm:$0xff]  ;;  %v869_v23 = vld [vmem:[%s4380_s12 + $0x1f8] sm:$0xff] }
 0x1b5   : > { %v3124_v25 = vpack.c.bf16 %v860_v19, %v856_v17  ;;  %v3094_v26 = vpack.c.bf16 %v867_v21, %v863_v20  ;;  %v862_v27 = vld [vmem:[%s4380_s12 + $0x1c0] sm:$0xff]  ;;  %v864_v29 = vld [vmem:[%s4380_s12 + $0x1d0] sm:$0xff]  ;;  %v3126_v30 = vpack.c.bf16 %v869_v23, %v865_v22  ;;  %v1151_v32 = vld [vmem:[%s4387_s8 + $0x8] sm:$0xff] }
 0x1b6   : > { %3085 = vmatpush1.bf16.msra.mxu0 %v3084_v5  ;;  %v866_v28 = vld [vmem:[%s4380_s12 + $0x1e0] sm:$0xff]  ;;  %v868_v31 = vld [vmem:[%s4380_s12 + $0x1f0] sm:$0xff]  ;;  %v1155_v33 = vld [vmem:[%s4387_s8 + $0x28] sm:$0xff] }
 0x1b7   : > { %3117 = vmatpush1.bf16.msra.mxu1 %v3116_v41  ;;  %3087 = vmatprep.subr.bf16.mxu0 %v3086_v42  ;;  %v1153_v34 = vld [vmem:[%s4387_s8 + $0x18] sm:$0xff]  ;;  %v3096_v36 = vpack.c.bf16 %v866_v28, %v862_v27  ;;  %v3128_v37 = vpack.c.bf16 %v868_v31, %v864_v29  ;;  %v4562_v38 = vpack.c.bf16 %v1155_v33, %v1151_v32  ;;  %v1150_v39 = vld [vmem:[%s4387_s8] sm:$0xff]  ;;  %v1152_v44 = vld [vmem:[%s4387_s8 + $0x10] sm:$0xff] }
 0x1b8   : > { %3119 = vmatprep.subr.bf16.mxu1 %v3118_v57  ;;  %v1157_v35 = vld [vmem:[%s4387_s8 + $0x38] sm:$0xff]  ;;  %v1154_v40 = vld [vmem:[%s4387_s8 + $0x20] sm:$0xff]  ;;  %v1156_v45 = vld [vmem:[%s4387_s8 + $0x30] sm:$0xff] }
 0x1b9   : > { %v4566_v43 = vpack.c.bf16 %v1157_v35, %v1153_v34  ;;  %v1159_v46 = vld [vmem:[%s4387_s8 + $0x48] sm:$0xff]  ;;  %v798_v48 = vld [vmem:[#allocation2] sm:$0xff]  ;;  %v4572_v50 = vpack.c.bf16 %v1154_v40, %v1150_v39  ;;  %v1161_v51 = vld [vmem:[%s4387_s8 + $0x58] sm:$0xff]  ;;  %v4577_v53 = vpack.c.bf16 %v1156_v45, %v1152_v44 }
 0x1ba   : > { %3089 = vmatpush1.bf16.msra.mxu0 %v3088_v11  ;;  %v1163_v47 = vld [vmem:[%s4387_s8 + $0x68] sm:$0xff]  ;;  %v1165_v52 = vld [vmem:[%s4387_s8 + $0x78] sm:$0xff]  ;;  %v1158_v56 = vld [vmem:[%s4387_s8 + $0x40] sm:$0xff] }
 0x1bb   : > { %3121 = vmatpush1.bf16.msra.mxu1 %v3120_v12  ;;  %3091 = vmatprep.subr.bf16.mxu0 %v3090_v14  ;;  %v1162_v58 = vld [vmem:[%s4387_s8 + $0x60] sm:$0xff]  ;;  %v4582_v13 = vpack.c.bf16 %v1163_v47, %v1159_v46  ;;  %v1160_v59 = vld [vmem:[%s4387_s8 + $0x50] sm:$0xff]  ;;  %v4586_v62 = vpack.c.bf16 %v1165_v52, %v1161_v51  ;;  %v1167_v63 = vld [vmem:[%s4387_s8 + $0x88] sm:$0xff] }
 0x1bc   : > { %3123 = vmatprep.subr.bf16.mxu1 %v3122_v18  ;;  %v1164_v60 = vld [vmem:[%s4387_s8 + $0x70] sm:$0xff]  ;;  %v1171_v0 = vld [vmem:[%s4387_s8 + $0xa8] sm:$0xff]  ;;  %v4591_v2 = vpack.c.bf16 %v1162_v58, %v1158_v56  ;;  %v1169_v3 = vld [vmem:[%s4387_s8 + $0x98] sm:$0xff] }
 0x1bd   : > { %v799_v1 = vld [vmem:[#allocation2 + $0x8] sm:$0xff]  ;;  %v1173_v4 = vld [vmem:[%s4387_s8 + $0xb8] sm:$0xff]  ;;  %v4597_v5 = vpack.c.bf16 %v1164_v60, %v1160_v59  ;;  %v1166_v41 = vld [vmem:[%s4387_s8 + $0x80] sm:$0xff]  ;;  %v4603_v49 = vpack.c.bf16 %v1171_v0, %v1167_v63 }
 0x1be   : > { %3093 = vmatpush1.bf16.msra.mxu0 %v3092_v24  ;;  %v1170_v42 = vld [vmem:[%s4387_s8 + $0xa0] sm:$0xff]  ;;  %v1168_v54 = vld [vmem:[%s4387_s8 + $0x90] sm:$0xff]  ;;  %v4608_v57 = vpack.c.bf16 %v1173_v4, %v1169_v3  ;;  %v1175_v61 = vld [vmem:[%s4387_s8 + $0xc8] sm:$0xff] }
 0x1bf   : > { %3125 = vmatpush1.bf16.msra.mxu1 %v3124_v25  ;;  %3095 = vmatprep.subr.bf16.mxu0 %v3094_v26  ;;  %v1172_v55 = vld [vmem:[%s4387_s8 + $0xb0] sm:$0xff]  ;;  %v1179_v7 = vld [vmem:[%s4387_s8 + $0xe8] sm:$0xff]  ;;  %v4613_v9 = vpack.c.bf16 %v1170_v42, %v1166_v41  ;;  %v1177_v10 = vld [vmem:[%s4387_s8 + $0xd8] sm:$0xff] }
 0x1c0   : > { %3127 = vmatprep.subr.bf16.mxu1 %v3126_v30  ;;  %v800_v8 = vld [vmem:[#allocation2 + $0x10] sm:$0xff]  ;;  %v1181_v11 = vld [vmem:[%s4387_s8 + $0xf8] sm:$0xff]  ;;  %v4619_v12 = vpack.c.bf16 %v1172_v55, %v1168_v54  ;;  %v1174_v14 = vld [vmem:[%s4387_s8 + $0xc0] sm:$0xff]  ;;  %v4625_v16 = vpack.c.bf16 %v1179_v7, %v1175_v61 }
 0x1c1   : > { %v1178_v15 = vld [vmem:[%s4387_s8 + $0xe0] sm:$0xff]  ;;  %v1176_v17 = vld [vmem:[%s4387_s8 + $0xd0] sm:$0xff]  ;;  %v4630_v19 = vpack.c.bf16 %v1181_v11, %v1177_v10  ;;  %v1183_v20 = vld [vmem:[%s4387_s8 + $0x108] sm:$0xff] }
 0x1c2   : > { %3097 = vmatpush1.bf16.msra.mxu0 %v3096_v36  ;;  %v1180_v18 = vld [vmem:[%s4387_s8 + $0xf0] sm:$0xff]  ;;  %v1187_v21 = vld [vmem:[%s4387_s8 + $0x128] sm:$0xff]  ;;  %v801_v22 = vld [vmem:[#allocation2 + $0x18] sm:$0xff]  ;;  %v4635_v23 = vpack.c.bf16 %v1178_v15, %v1174_v14 }
 0x1c3   : > { %3129 = vmatpush1.bf16.msra.mxu1 %v3128_v37  ;;  %3131 = vmatprep.subr.bf16.mxu0 %v4562_v38  ;;  %v1185_v24 = vld [vmem:[%s4387_s8 + $0x118] sm:$0xff]  ;;  %v4641_v26 = vpack.c.bf16 %v1180_v18, %v1176_v17  ;;  %v1182_v27 = vld [vmem:[%s4387_s8 + $0x100] sm:$0xff]  ;;  %v4647_v29 = vpack.c.bf16 %v1187_v21, %v1183_v20  ;;  %v1184_v30 = vld [vmem:[%s4387_s8 + $0x110] sm:$0xff] }
 0x1c4   : > { %3163 = vmatprep.subr.bf16.mxu1 %v4566_v43  ;;  %v1189_v25 = vld [vmem:[%s4387_s8 + $0x138] sm:$0xff]  ;;  %v1186_v28 = vld [vmem:[%s4387_s8 + $0x120] sm:$0xff]  ;;  %v1188_v31 = vld [vmem:[%s4387_s8 + $0x130] sm:$0xff] }
 0x1c5   : > { %957 = vmatmul.mubr.f32.vlgmr.msra.gmra.mrb[0].mxu0 %v798_v48  ;;  %v4652_v32 = vpack.c.bf16 %v1189_v25, %v1185_v24  ;;  %v1191_v33 = vld [vmem:[%s4387_s8 + $0x148] sm:$0xff]  ;;  %v802_v35 = vld [vmem:[#allocation2 + $0x20] sm:$0xff]  ;;  %v4657_v36 = vpack.c.bf16 %v1186_v28, %v1182_v27  ;;  %v1193_v37 = vld [vmem:[%s4387_s8 + $0x158] sm:$0xff]  ;;  %v4663_v40 = vpack.c.bf16 %v1188_v31, %v1184_v30  ;;  %v872_v28 = vlaneseq }
 0x1c6   : > { %1070 = vmatmul.mubr.f32.vlgmr.msra.gmra.mrb[0].mxu1 %v798_v48  ;;  %3133 = vmatpush1.bf16.msra.mxu0 %v4572_v50  ;;  %v1195_v34 = vld [vmem:[%s4387_s8 + $0x168] sm:$0xff]  ;;  %v1197_v39 = vld [vmem:[%s4387_s8 + $0x178] sm:$0xff]  ;;  %v1190_v44 = vld [vmem:[%s4387_s8 + $0x140] sm:$0xff] }
 0x1c7   : > { %3165 = vmatpush1.bf16.msra.mxu1 %v4577_v53  ;;  %962 = vmatprep.mubr.f32.mxu0 %v4156_v6  ;;  %v1194_v45 = vld [vmem:[%s4387_s8 + $0x160] sm:$0xff]  ;;  %v4669_v46 = vpack.c.bf16 %v1195_v34, %v1191_v33  ;;  %v1192_v47 = vld [vmem:[%s4387_s8 + $0x150] sm:$0xff]  ;;  %v4674_v51 = vpack.c.bf16 %v1197_v39, %v1193_v37  ;;  %v1199_v52 = vld [vmem:[%s4387_s8 + $0x188] sm:$0xff]  ;;  %v873_v30 = vshrl.u32 %v872_v28, 7 }
 0x1c8   : > { %1075 = vmatprep.mubr.f32.mxu1 %v4156_v6  ;;  %3135 = vmatprep.subr.bf16.mxu0 %v4582_v13  ;;  %v1196_v48 = vld [vmem:[%s4387_s8 + $0x170] sm:$0xff]  ;;  %v1203_v56 = vld [vmem:[%s4387_s8 + $0x1a8] sm:$0xff]  ;;  %v4679_v59 = vpack.c.bf16 %v1194_v45, %v1190_v44  ;;  %v1201_v60 = vld [vmem:[%s4387_s8 + $0x198] sm:$0xff] }
 0x1c9   : > { %963 = vmatmul.mubr.f32.gmra.mrb[2].mxu0 %v799_v1  ;;  %3167 = vmatprep.subr.bf16.mxu1 %v4586_v62  ;;  %v803_v58 = vld [vmem:[#allocation2 + $0x28] sm:$0xff]  ;;  %v1205_v63 = vld [vmem:[%s4387_s8 + $0x1b8] sm:$0xff]  ;;  %v4685_v0 = vpack.c.bf16 %v1196_v48, %v1192_v47  ;;  %v1202_v3 = vld [vmem:[%s4387_s8 + $0x1a0] sm:$0xff]  ;;  %v4691_v4 = vpack.c.bf16 %v1203_v56, %v1199_v52  ;;  %v874_v31 = vsub.s32 0, %v873_v30  ;;  %v878_v34 = vsub.s32 1, %v873_v30 }
 0x1ca   : > { %1076 = vmatmul.mubr.f32.gmra.mrb[2].mxu1 %v799_v1  ;;  %3137 = vmatpush1.bf16.msra.mxu0 %v4591_v2  ;;  %v1198_v1 = vld [vmem:[%s4387_s8 + $0x180] sm:$0xff]  ;;  %v1200_v41 = vld [vmem:[%s4387_s8 + $0x190] sm:$0xff]  ;;  %v4696_v54 = vpack.c.bf16 %v1205_v63, %v1201_v60  ;;  %v1207_v55 = vld [vmem:[%s4387_s8 + $0x1c8] sm:$0xff]  ;;  %v886_v44 = vsub.s32 3, %v873_v30 }
 0x1cb   : > { %3169 = vmatpush1.bf16.msra.mxu1 %v4597_v5  ;;  %968 = vmatprep.mubr.f32.mxu0 %v4156_v6  ;;  %v1204_v42 = vld [vmem:[%s4387_s8 + $0x1b0] sm:$0xff]  ;;  %v1211_v61 = vld [vmem:[%s4387_s8 + $0x1e8] sm:$0xff]  ;;  %v1209_v10 = vld [vmem:[%s4387_s8 + $0x1d8] sm:$0xff] }
 0x1cc   : > { %1081 = vmatprep.mubr.f32.mxu1 %v4156_v6  ;;  %3139 = vmatprep.subr.bf16.mxu0 %v4603_v49  ;;  %v804_v7 = vld [vmem:[#allocation2 + $0x30] sm:$0xff]  ;;  %v1213_v11 = vld [vmem:[%s4387_s8 + $0x1f8] sm:$0xff]  ;;  %v4707_v14 = vpack.c.bf16 %v1204_v42, %v1200_v41  ;;  %v1206_v15 = vld [vmem:[%s4387_s8 + $0x1c0] sm:$0xff]  ;;  %v4713_v18 = vpack.c.bf16 %v1211_v61, %v1207_v55 }
 0x1cd   : > { %969 = vmatmul.mubr.f32.gmra.mrb[4].mxu0 %v800_v8  ;;  %3171 = vmatprep.subr.bf16.mxu1 %v4608_v57  ;;  %v1210_v17 = vld [vmem:[%s4387_s8 + $0x1e0] sm:$0xff]  ;;  %v1208_v20 = vld [vmem:[%s4387_s8 + $0x1d0] sm:$0xff]  ;;  %v805_v24 = vld [vmem:[#allocation2 + $0x38] sm:$0xff] }
 0x1ce   : > { %1082 = vmatmul.mubr.f32.gmra.mrb[4].mxu1 %v800_v8  ;;  %3141 = vmatpush1.bf16.msra.mxu0 %v4613_v9  ;;  %v4701_v8 = vpack.c.bf16 %v1202_v3, %v1198_v1  ;;  %v1212_v21 = vld [vmem:[%s4387_s8 + $0x1f0] sm:$0xff]  ;;  %v4721_v25 = vpack.c.bf16 %v1210_v17, %v1206_v15  ;;  %v882_v1 = vsub.s32 2, %v873_v30 }
 0x1cf   : > { %3173 = vmatpush1.bf16.msra.mxu1 %v4619_v12  ;;  %974 = vmatprep.mubr.f32.mxu0 %v4156_v6  ;;  %v4725_v27 = vpack.c.bf16 %v1212_v21, %v1208_v20  ;;  %v870_v33 = vld [vmem:[%s4402_s13] sm:$0xf] }
 0x1d0   : > { %1087 = vmatprep.mubr.f32.mxu1 %v4156_v6  ;;  %3143 = vmatprep.subr.bf16.mxu0 %v4625_v16  ;;  %v4775_v37 = vrot.slane %v870_v33, %v878_v34  ;;  %v4779_v63 = vrot.slane %v870_v33, %v886_v44  ;;  %v4782_v41 = vrot.slane %v870_v33, %v882_v1 }
 0x1d1   : > { %975 = vmatmul.mubr.f32.gmra.mrb[6].mxu0 %v801_v22  ;;  %3175 = vmatprep.subr.bf16.mxu1 %v4630_v19 }
 0x1d2   : > { %1088 = vmatmul.mubr.f32.gmra.mrb[6].mxu1 %v801_v22  ;;  %3145 = vmatpush1.bf16.msra.mxu0 %v4635_v23  ;;  %v4718_v22 = vpack.c.bf16 %v1213_v11, %v1209_v10 }
 0x1d3   : > { %3177 = vmatpush1.bf16.msra.mxu1 %v4641_v26  ;;  %980 = vmatprep.mubr.f32.mxu0 %v4156_v6 }
 0x1d4   : > { %1093 = vmatprep.mubr.f32.mxu1 %v4156_v6  ;;  %3147 = vmatprep.subr.bf16.mxu0 %v4647_v29 }
 0x1d5   : > { %981 = vmatmul.mubr.f32.gmra.mrb[8].mxu0 %v802_v35  ;;  %3179 = vmatprep.subr.bf16.mxu1 %v4652_v32 }
 0x1d6   : > { %1094 = vmatmul.mubr.f32.gmra.mrb[8].mxu1 %v802_v35  ;;  %3149 = vmatpush1.bf16.msra.mxu0 %v4657_v36  ;;  %v4773_v35 = vrot.slane %v870_v33, %v874_v31 }
 0x1d7   : > { %3181 = vmatpush1.bf16.msra.mxu1 %v4663_v40  ;;  %986 = vmatprep.mubr.f32.mxu0 %v4156_v6 }
 0x1d8   : > { %1099 = vmatprep.mubr.f32.mxu1 %v4156_v6  ;;  %3151 = vmatprep.subr.bf16.mxu0 %v4669_v46 }
 0x1d9   : > { %987 = vmatmul.mubr.f32.gmra.mrb[10].mxu0 %v803_v58  ;;  %3183 = vmatprep.subr.bf16.mxu1 %v4674_v51 }
 0x1da   : > { %1100 = vmatmul.mubr.f32.gmra.mrb[10].mxu1 %v803_v58  ;;  %3153 = vmatpush1.bf16.msra.mxu0 %v4679_v59 }
 0x1db   : > { %3185 = vmatpush1.bf16.msra.mxu1 %v4685_v0  ;;  %992 = vmatprep.mubr.f32.mxu0 %v4156_v6 }
 0x1dc   : > { %1105 = vmatprep.mubr.f32.mxu1 %v4156_v6  ;;  %3155 = vmatprep.subr.bf16.mxu0 %v4691_v4 }
 0x1dd   : > { %993 = vmatmul.mubr.f32.gmra.mrb[12].mxu0 %v804_v7  ;;  %3187 = vmatprep.subr.bf16.mxu1 %v4696_v54 }
 0x1de   : > { %1106 = vmatmul.mubr.f32.gmra.mrb[12].mxu1 %v804_v7  ;;  %3157 = vmatpush1.bf16.msra.mxu0 %v4701_v8 }
 0x1df   : > { %3189 = vmatpush1.bf16.msra.mxu1 %v4707_v14  ;;  %998 = vmatprep.mubr.f32.mxu0 %v4156_v6 }
 0x1e0   : > { %1111 = vmatprep.mubr.f32.mxu1 %v4156_v6  ;;  %3159 = vmatprep.subr.bf16.mxu0 %v4713_v18 }
 0x1e1   : > { %999 = vmatmul.mubr.f32.gmra.mrb[14].mxu0 %v805_v24  ;;  %3191 = vmatprep.subr.bf16.mxu1 %v4718_v22 }
 0x1e2   : > { %1112 = vmatmul.mubr.f32.gmra.mrb[14].mxu1 %v805_v24  ;;  %3161 = vmatpush1.bf16.msra.mxu0 %v4721_v25 }
 0x1e3   : > { %3193 = vmatpush1.bf16.msra.mxu1 %v4725_v27  ;;  %1285 = vmatprep.mubr.f32.mxu0 %v4156_v6 }
 0x1e4   : > { %1356 = vmatprep.mubr.f32.mxu1 %v4156_v6  ;;  %3195 = vmatprep.subr.bf16.mxu0 %v4562_v38 }
 0x1e5   : > { %1286 = vmatmul.mubr.f32.vlgmr.msra.gmra.mrb[0].mxu0 %v4156_v6  ;;  %3227 = vmatprep.subr.bf16.mxu1 %v4566_v43 }
 0x1e6   : > { %1357 = vmatmul.mubr.f32.vlgmr.msra.gmra.mrb[0].mxu1 %v4156_v6  ;;  %3197 = vmatpush1.bf16.msra.mxu0 %v4572_v50 }
 0x1e7   : > { %3229 = vmatpush1.bf16.msra.mxu1 %v4577_v53  ;;  %3199 = vmatprep.subr.bf16.mxu0 %v4582_v13 }
 0x1e8   : > { %3231 = vmatprep.subr.bf16.mxu1 %v4586_v62  ;;  %1463 = vmatprep.mubr.f32.mxu0 %v4156_v6 }
 0x1e9   : > { %1534 = vmatprep.mubr.f32.mxu1 %v4156_v6 }
 0x1ea   : > { %3201 = vmatpush1.bf16.msra.mxu0 %v4591_v2 }
 0x1eb   : > { %3233 = vmatpush1.bf16.msra.mxu1 %v4597_v5  ;;  %3203 = vmatprep.subr.bf16.mxu0 %v4603_v49 }
 0x1ec   : > { %3235 = vmatprep.subr.bf16.mxu1 %v4608_v57 }
 0x1ee   : > { %3205 = vmatpush1.bf16.msra.mxu0 %v4613_v9 }
 0x1ef   : > { %3237 = vmatpush1.bf16.msra.mxu1 %v4619_v12  ;;  %3207 = vmatprep.subr.bf16.mxu0 %v4625_v16 }
 0x1f0   : > { %3239 = vmatprep.subr.bf16.mxu1 %v4630_v19 }
 0x1f2   : > { %3209 = vmatpush1.bf16.msra.mxu0 %v4635_v23 }
 0x1f3   : > { %3241 = vmatpush1.bf16.msra.mxu1 %v4641_v26  ;;  %3211 = vmatprep.subr.bf16.mxu0 %v4647_v29 }
 0x1f4   : > { %3243 = vmatprep.subr.bf16.mxu1 %v4652_v32 }
 0x1f6   : > { %3213 = vmatpush1.bf16.msra.mxu0 %v4657_v36 }
 0x1f7   : > { %3245 = vmatpush1.bf16.msra.mxu1 %v4663_v40  ;;  %3215 = vmatprep.subr.bf16.mxu0 %v4669_v46 }
 0x1f8   : > { %3247 = vmatprep.subr.bf16.mxu1 %v4674_v51 }
 0x1fa   : > { %3217 = vmatpush1.bf16.msra.mxu0 %v4679_v59 }
 0x1fb   : > { %3249 = vmatpush1.bf16.msra.mxu1 %v4685_v0  ;;  %3219 = vmatprep.subr.bf16.mxu0 %v4691_v4 }
 0x1fc   : > { %3251 = vmatprep.subr.bf16.mxu1 %v4696_v54 }
 0x1fe   : > { %3221 = vmatpush1.bf16.msra.mxu0 %v4701_v8 }
 0x1ff   : > { %3253 = vmatpush1.bf16.msra.mxu1 %v4707_v14  ;;  %3223 = vmatprep.subr.bf16.mxu0 %v4713_v18 }
 0x200   : > { %3255 = vmatprep.subr.bf16.mxu1 %v4718_v22 }
 0x202   : > { %3225 = vmatpush1.bf16.msra.mxu0 %v4721_v25 }
 0x203   : > { %3257 = vmatpush1.bf16.msra.mxu1 %v4725_v27  ;;  %3259 = vmatprep.subr.bf16.mxu0 %v4562_v38 }
 0x204   : > { %3291 = vmatprep.subr.bf16.mxu1 %v4566_v43 }
 0x2b8   : > { %v1287_v39 = vpop.f32.mrb[0].mxu0 }
 0x2b9   : > { %v3676_v45 = vadd.f32 %v1287_v39, %v4773_v35  ;;  %v1358_v47 = vpop.f32.mrb[0].mxu1  ;;  %v1289_v48 = vpop.f32.mrb[1].mxu0 }
 0x2ba   : > { %v3677_v52 = vadd.f32 %v1289_v48, %v4775_v37  ;;  %v1360_v56 = vpop.f32.mrb[1].mxu1  ;;  %v3692_v55 = vadd.f32 %v1358_v47, %v4782_v41 }
 0x2bb   : > { %v2936_v58 = vmul.f32 -1.442695, %v3676_v45  ;;  %v3693_v3 = vadd.f32 %v1360_v56, %v4779_v63 }
 0x2bc   : > { %v2937_v60 = vmul.f32 -1.442695, %v3677_v52 }
 0x2bd   : > { %3843 = vpow2.f32 %v2936_v58  ;;  %v2938_v42 = vmul.f32 -1.442695, %v3693_v3 }
 0x2be   : > { %3845 = vpow2.f32 %v2937_v60 }
 0x2bf   : > { %3847 = vpow2.f32 %v2938_v42 }
 0x2c0   : > { %3849 = vtanh.f32 %v3692_v55 }
 0x2c7   : > { %v3844_v61 = vpop.eup %3843 }
 0x2c8   : > { %v3846_v7 = vpop.eup %3845  ;;  %v1370_v10 = vadd.f32 1.0, %v3844_v61 }
 0x2c9   : > { %v1376_v11 = vadd.f32 1.0, %v3846_v7  ;;  %v3848_v15 = vpop.eup %3847 }
 0x2ca   : > { %3851 = vrcp.f32 %v1370_v10  ;;  %v3850_v17 = vpop.eup %3849  ;;  %v1383_v28 = vadd.f32 1.0, %v3848_v15 }
 0x2cb   : > { %3853 = vrcp.f32 %v1376_v11 }
 0x2cc   : > { %3855 = vrcp.f32 %v1383_v28 }
 0x2d4   : > { %v3852_v20 = vpop.eup %3851 }
 0x2d5   : > { %v3854_v21 = vpop.eup %3853  ;;  %v1387_v24 = vmul.f32 %v3852_v20, %v3850_v17 }
 0x2d6   : > { %v1386_v30 = vmul.f32 0.0, %v3854_v21  ;;  %v3856_v33 = vpop.eup %3855 }
 0x2d8   : > { %v4785_v31 = vadd.f32 %v1387_v24, %v1386_v30 }
 0x2da   : > { %3857 = vtanh.f32 %v4785_v31 }
 0x2e4   : > { %v3858_v34 = vpop.eup %3857 }
 0x2e5   : > { %v1390_v39 = vmul.f32 %v3858_v34, %v3856_v33 }
 0x2e7   : > { %1391 = vst [vmem:[#allocation2] sm:$0xff] %v1390_v39  ;;  %1464 = vmatmul.mubr.f32.vlgmr.msra.gmra.mrb[2].mxu0 %v1390_v39  ;;  %1535 = vmatmul.mubr.f32.vlgmr.msra.gmra.mrb[2].mxu1 %v1390_v39 }
 0x2e8   : > { %3261 = vmatpush1.bf16.msra.mxu0 %v4572_v50  ;;  %3293 = vmatpush1.bf16.msra.mxu1 %v4577_v53 }
 0x2e9   : > { %3263 = vmatprep.subr.bf16.mxu0 %v4582_v13  ;;  %3295 = vmatprep.subr.bf16.mxu1 %v4586_v62 }
 0x2ea   : > { %1642 = vmatprep.mubr.f32.mxu0 %v4156_v6  ;;  %1713 = vmatprep.mubr.f32.mxu1 %v4156_v6 }
 0x2ec   : > { %3265 = vmatpush1.bf16.msra.mxu0 %v4591_v2  ;;  %3297 = vmatpush1.bf16.msra.mxu1 %v4597_v5 }
 0x2ed   : > { %3267 = vmatprep.subr.bf16.mxu0 %v4603_v49  ;;  %3299 = vmatprep.subr.bf16.mxu1 %v4608_v57 }
 0x2f0   : > { %3269 = vmatpush1.bf16.msra.mxu0 %v4613_v9  ;;  %3301 = vmatpush1.bf16.msra.mxu1 %v4619_v12 }
 0x2f1   : > { %3271 = vmatprep.subr.bf16.mxu0 %v4625_v16  ;;  %3303 = vmatprep.subr.bf16.mxu1 %v4630_v19 }
 0x2f4   : > { %3273 = vmatpush1.bf16.msra.mxu0 %v4635_v23  ;;  %3305 = vmatpush1.bf16.msra.mxu1 %v4641_v26 }
 0x2f5   : > { %3275 = vmatprep.subr.bf16.mxu0 %v4647_v29  ;;  %3307 = vmatprep.subr.bf16.mxu1 %v4652_v32 }
 0x2f8   : > { %3277 = vmatpush1.bf16.msra.mxu0 %v4657_v36  ;;  %3309 = vmatpush1.bf16.msra.mxu1 %v4663_v40 }
 0x2f9   : > { %3279 = vmatprep.subr.bf16.mxu0 %v4669_v46  ;;  %3311 = vmatprep.subr.bf16.mxu1 %v4674_v51 }
 0x2fc   : > { %3281 = vmatpush1.bf16.msra.mxu0 %v4679_v59  ;;  %3313 = vmatpush1.bf16.msra.mxu1 %v4685_v0 }
 0x2fd   : > { %3283 = vmatprep.subr.bf16.mxu0 %v4691_v4  ;;  %3315 = vmatprep.subr.bf16.mxu1 %v4696_v54 }
 0x300   : > { %3285 = vmatpush1.bf16.msra.mxu0 %v4701_v8  ;;  %3317 = vmatpush1.bf16.msra.mxu1 %v4707_v14 }
 0x301   : > { %3287 = vmatprep.subr.bf16.mxu0 %v4713_v18  ;;  %3319 = vmatprep.subr.bf16.mxu1 %v4718_v22 }
 0x304   : > { %3289 = vmatpush1.bf16.msra.mxu0 %v4721_v25  ;;  %3321 = vmatpush1.bf16.msra.mxu1 %v4725_v27 }
 0x305   : > { %3323 = vmatprep.subr.bf16.mxu0 %v4562_v38  ;;  %3355 = vmatprep.subr.bf16.mxu1 %v4566_v43 }
 0x3ba   : > { %v1465_v44 = vpop.f32.mrb[2].mxu0  ;;  %v1536_v45 = vpop.f32.mrb[2].mxu1 }
 0x3bb   : > { %v3678_v47 = vadd.f32 %v1465_v44, %v4773_v35  ;;  %v1467_v48 = vpop.f32.mrb[3].mxu0  ;;  %v1538_v52 = vpop.f32.mrb[3].mxu1  ;;  %v3694_v42 = vadd.f32 %v1536_v45, %v4782_v41 }
 0x3bc   : > { %v3679_v56 = vadd.f32 %v1467_v48, %v4775_v37  ;;  %v3695_v1 = vadd.f32 %v1538_v52, %v4779_v63 }
 0x3bd   : > { %v2939_v58 = vmul.f32 -1.442695, %v3678_v47 }
 0x3be   : > { %v2940_v60 = vmul.f32 -1.442695, %v3679_v56  ;;  %v2941_v3 = vmul.f32 -1.442695, %v3695_v1 }
 0x3bf   : > { %3859 = vpow2.f32 %v2939_v58 }
 0x3c0   : > { %3861 = vpow2.f32 %v2940_v60 }
 0x3c1   : > { %3863 = vpow2.f32 %v2941_v3 }
 0x3c2   : > { %3865 = vtanh.f32 %v3694_v42 }
 0x3c9   : > { %v3860_v55 = vpop.eup %3859 }
 0x3ca   : > { %v3862_v61 = vpop.eup %3861  ;;  %v1548_v7 = vadd.f32 1.0, %v3860_v55 }
 0x3cb   : > { %v1554_v10 = vadd.f32 1.0, %v3862_v61  ;;  %v3864_v11 = vpop.eup %3863 }
 0x3cc   : > { %3867 = vrcp.f32 %v1548_v7  ;;  %v3866_v15 = vpop.eup %3865  ;;  %v1561_v24 = vadd.f32 1.0, %v3864_v11 }
 0x3cd   : > { %3869 = vrcp.f32 %v1554_v10 }
 0x3ce   : > { %3871 = vrcp.f32 %v1561_v24 }
 0x3d6   : > { %v3868_v17 = vpop.eup %3867 }
 0x3d7   : > { %v3870_v20 = vpop.eup %3869  ;;  %v1565_v21 = vmul.f32 %v3868_v17, %v3866_v15 }
 0x3d8   : > { %v1564_v28 = vmul.f32 %v3870_v20, %v4785_v31  ;;  %v3872_v33 = vpop.eup %3871 }
 0x3da   : > { %v4827_v30 = vadd.f32 %v1565_v21, %v1564_v28 }
 0x3dc   : > { %3873 = vtanh.f32 %v4827_v30 }
 0x3e6   : > { %v3874_v34 = vpop.eup %3873 }
 0x3e7   : > { %v1568_v39 = vmul.f32 %v3874_v34, %v3872_v33 }
 0x3e9   : > { %1570 = vst [vmem:[#allocation2 + $0x8] sm:$0xff] %v1568_v39  ;;  %1643 = vmatmul.mubr.f32.vlgmr.msra.gmra.mrb[4].mxu0 %v1568_v39  ;;  %1714 = vmatmul.mubr.f32.vlgmr.msra.gmra.mrb[4].mxu1 %v1568_v39 }
 0x3ea   : > { %3325 = vmatpush1.bf16.msra.mxu0 %v4572_v50  ;;  %3357 = vmatpush1.bf16.msra.mxu1 %v4577_v53 }
 0x3eb   : > { %3327 = vmatprep.subr.bf16.mxu0 %v4582_v13  ;;  %3359 = vmatprep.subr.bf16.mxu1 %v4586_v62 }
 0x3ec   : > { %1821 = vmatprep.mubr.f32.mxu0 %v4156_v6  ;;  %1892 = vmatprep.mubr.f32.mxu1 %v4156_v6 }
 0x3ee   : > { %3329 = vmatpush1.bf16.msra.mxu0 %v4591_v2  ;;  %3361 = vmatpush1.bf16.msra.mxu1 %v4597_v5 }
 0x3ef   : > { %3331 = vmatprep.subr.bf16.mxu0 %v4603_v49  ;;  %3363 = vmatprep.subr.bf16.mxu1 %v4608_v57 }
 0x3f2   : > { %3333 = vmatpush1.bf16.msra.mxu0 %v4613_v9  ;;  %3365 = vmatpush1.bf16.msra.mxu1 %v4619_v12 }
 0x3f3   : > { %3335 = vmatprep.subr.bf16.mxu0 %v4625_v16  ;;  %3367 = vmatprep.subr.bf16.mxu1 %v4630_v19 }
 0x3f6   : > { %3337 = vmatpush1.bf16.msra.mxu0 %v4635_v23  ;;  %3369 = vmatpush1.bf16.msra.mxu1 %v4641_v26 }
 0x3f7   : > { %3339 = vmatprep.subr.bf16.mxu0 %v4647_v29  ;;  %3371 = vmatprep.subr.bf16.mxu1 %v4652_v32 }
 0x3fa   : > { %3341 = vmatpush1.bf16.msra.mxu0 %v4657_v36  ;;  %3373 = vmatpush1.bf16.msra.mxu1 %v4663_v40 }
 0x3fb   : > { %3343 = vmatprep.subr.bf16.mxu0 %v4669_v46  ;;  %3375 = vmatprep.subr.bf16.mxu1 %v4674_v51 }
 0x3fe   : > { %3345 = vmatpush1.bf16.msra.mxu0 %v4679_v59  ;;  %3377 = vmatpush1.bf16.msra.mxu1 %v4685_v0 }
 0x3ff   : > { %3347 = vmatprep.subr.bf16.mxu0 %v4691_v4  ;;  %3379 = vmatprep.subr.bf16.mxu1 %v4696_v54 }
 0x402   : > { %3349 = vmatpush1.bf16.msra.mxu0 %v4701_v8  ;;  %3381 = vmatpush1.bf16.msra.mxu1 %v4707_v14 }
 0x403   : > { %3351 = vmatprep.subr.bf16.mxu0 %v4713_v18  ;;  %3383 = vmatprep.subr.bf16.mxu1 %v4718_v22 }
 0x406   : > { %3353 = vmatpush1.bf16.msra.mxu0 %v4721_v25  ;;  %3385 = vmatpush1.bf16.msra.mxu1 %v4725_v27 }
 0x407   : > { %3387 = vmatprep.subr.bf16.mxu0 %v4562_v38  ;;  %3419 = vmatprep.subr.bf16.mxu1 %v4566_v43 }
 0x4bc   : > { %v1644_v31 = vpop.f32.mrb[4].mxu0  ;;  %v1715_v44 = vpop.f32.mrb[4].mxu1 }
 0x4bd   : > { %v3680_v45 = vadd.f32 %v1644_v31, %v4773_v35  ;;  %v1646_v47 = vpop.f32.mrb[5].mxu0  ;;  %v1717_v48 = vpop.f32.mrb[5].mxu1  ;;  %v3696_v3 = vadd.f32 %v1715_v44, %v4782_v41 }
 0x4be   : > { %v3681_v52 = vadd.f32 %v1646_v47, %v4775_v37  ;;  %v3697_v60 = vadd.f32 %v1717_v48, %v4779_v63 }
 0x4bf   : > { %v2942_v56 = vmul.f32 -1.442695, %v3680_v45 }
 0x4c0   : > { %v2943_v58 = vmul.f32 -1.442695, %v3681_v52  ;;  %v2944_v1 = vmul.f32 -1.442695, %v3697_v60 }
 0x4c1   : > { %3875 = vpow2.f32 %v2942_v56 }
 0x4c2   : > { %3877 = vpow2.f32 %v2943_v58 }
 0x4c3   : > { %3879 = vpow2.f32 %v2944_v1 }
 0x4c4   : > { %3881 = vtanh.f32 %v3696_v3 }
 0x4cb   : > { %v3876_v42 = vpop.eup %3875 }
 0x4cc   : > { %v3878_v55 = vpop.eup %3877  ;;  %v1727_v61 = vadd.f32 1.0, %v3876_v42 }
 0x4cd   : > { %v1733_v7 = vadd.f32 1.0, %v3878_v55  ;;  %v3880_v10 = vpop.eup %3879 }
 0x4ce   : > { %3883 = vrcp.f32 %v1727_v61  ;;  %v3882_v11 = vpop.eup %3881  ;;  %v1740_v21 = vadd.f32 1.0, %v3880_v10 }
 0x4cf   : > { %3885 = vrcp.f32 %v1733_v7 }
 0x4d0   : > { %3887 = vrcp.f32 %v1740_v21 }
 0x4d8   : > { %v3884_v15 = vpop.eup %3883 }
 0x4d9   : > { %v3886_v17 = vpop.eup %3885  ;;  %v1744_v20 = vmul.f32 %v3884_v15, %v3882_v11 }
 0x4da   : > { %v1743_v24 = vmul.f32 %v3886_v17, %v4827_v30  ;;  %v3888_v33 = vpop.eup %3887 }
 0x4dc   : > { %v4869_v28 = vadd.f32 %v1744_v20, %v1743_v24 }
 0x4de   : > { %3889 = vtanh.f32 %v4869_v28 }
 0x4e8   : > { %v3890_v34 = vpop.eup %3889 }
 0x4e9   : > { %v1747_v39 = vmul.f32 %v3890_v34, %v3888_v33 }
 0x4eb   : > { %1749 = vst [vmem:[#allocation2 + $0x10] sm:$0xff] %v1747_v39  ;;  %1822 = vmatmul.mubr.f32.vlgmr.msra.gmra.mrb[6].mxu0 %v1747_v39  ;;  %1893 = vmatmul.mubr.f32.vlgmr.msra.gmra.mrb[6].mxu1 %v1747_v39 }
 0x4ec   : > { %3389 = vmatpush1.bf16.msra.mxu0 %v4572_v50  ;;  %3421 = vmatpush1.bf16.msra.mxu1 %v4577_v53 }
 0x4ed   : > { %3391 = vmatprep.subr.bf16.mxu0 %v4582_v13  ;;  %3423 = vmatprep.subr.bf16.mxu1 %v4586_v62 }
 0x4ee   : > { %2000 = vmatprep.mubr.f32.mxu0 %v4156_v6  ;;  %2071 = vmatprep.mubr.f32.mxu1 %v4156_v6 }
 0x4f0   : > { %3393 = vmatpush1.bf16.msra.mxu0 %v4591_v2  ;;  %3425 = vmatpush1.bf16.msra.mxu1 %v4597_v5 }
 0x4f1   : > { %3395 = vmatprep.subr.bf16.mxu0 %v4603_v49  ;;  %3427 = vmatprep.subr.bf16.mxu1 %v4608_v57 }
 0x4f4   : > { %3397 = vmatpush1.bf16.msra.mxu0 %v4613_v9  ;;  %3429 = vmatpush1.bf16.msra.mxu1 %v4619_v12 }
 0x4f5   : > { %3399 = vmatprep.subr.bf16.mxu0 %v4625_v16  ;;  %3431 = vmatprep.subr.bf16.mxu1 %v4630_v19 }
 0x4f8   : > { %3401 = vmatpush1.bf16.msra.mxu0 %v4635_v23  ;;  %3433 = vmatpush1.bf16.msra.mxu1 %v4641_v26 }
 0x4f9   : > { %3403 = vmatprep.subr.bf16.mxu0 %v4647_v29  ;;  %3435 = vmatprep.subr.bf16.mxu1 %v4652_v32 }
 0x4fc   : > { %3405 = vmatpush1.bf16.msra.mxu0 %v4657_v36  ;;  %3437 = vmatpush1.bf16.msra.mxu1 %v4663_v40 }
 0x4fd   : > { %3407 = vmatprep.subr.bf16.mxu0 %v4669_v46  ;;  %3439 = vmatprep.subr.bf16.mxu1 %v4674_v51 }
 0x500   : > { %3409 = vmatpush1.bf16.msra.mxu0 %v4679_v59  ;;  %3441 = vmatpush1.bf16.msra.mxu1 %v4685_v0 }
 0x501   : > { %3411 = vmatprep.subr.bf16.mxu0 %v4691_v4  ;;  %3443 = vmatprep.subr.bf16.mxu1 %v4696_v54 }
 0x504   : > { %3413 = vmatpush1.bf16.msra.mxu0 %v4701_v8  ;;  %3445 = vmatpush1.bf16.msra.mxu1 %v4707_v14 }
 0x505   : > { %3415 = vmatprep.subr.bf16.mxu0 %v4713_v18  ;;  %3447 = vmatprep.subr.bf16.mxu1 %v4718_v22 }
 0x508   : > { %3417 = vmatpush1.bf16.msra.mxu0 %v4721_v25  ;;  %3449 = vmatpush1.bf16.msra.mxu1 %v4725_v27 }
 0x509   : > { %3451 = vmatprep.subr.bf16.mxu0 %v4562_v38  ;;  %3483 = vmatprep.subr.bf16.mxu1 %v4566_v43 }
 0x5be   : > { %v1823_v30 = vpop.f32.mrb[6].mxu0  ;;  %v1894_v31 = vpop.f32.mrb[6].mxu1 }
 0x5bf   : > { %v3682_v44 = vadd.f32 %v1823_v30, %v4773_v35  ;;  %v1825_v45 = vpop.f32.mrb[7].mxu0  ;;  %v1896_v47 = vpop.f32.mrb[7].mxu1  ;;  %v3698_v1 = vadd.f32 %v1894_v31, %v4782_v41 }
 0x5c0   : > { %v3683_v48 = vadd.f32 %v1825_v45, %v4775_v37  ;;  %v3699_v58 = vadd.f32 %v1896_v47, %v4779_v63 }
 0x5c1   : > { %v2945_v52 = vmul.f32 -1.442695, %v3682_v44 }
 0x5c2   : > { %v2946_v56 = vmul.f32 -1.442695, %v3683_v48  ;;  %v2947_v60 = vmul.f32 -1.442695, %v3699_v58 }
 0x5c3   : > { %3891 = vpow2.f32 %v2945_v52 }
 0x5c4   : > { %3893 = vpow2.f32 %v2946_v56 }
 0x5c5   : > { %3895 = vpow2.f32 %v2947_v60 }
 0x5c6   : > { %3897 = vtanh.f32 %v3698_v1 }
 0x5cd   : > { %v3892_v3 = vpop.eup %3891 }
 0x5ce   : > { %v3894_v42 = vpop.eup %3893  ;;  %v1906_v55 = vadd.f32 1.0, %v3892_v3 }
 0x5cf   : > { %v1912_v61 = vadd.f32 1.0, %v3894_v42  ;;  %v3896_v7 = vpop.eup %3895 }
 0x5d0   : > { %3899 = vrcp.f32 %v1906_v55  ;;  %v3898_v10 = vpop.eup %3897  ;;  %v1919_v20 = vadd.f32 1.0, %v3896_v7 }
 0x5d1   : > { %3901 = vrcp.f32 %v1912_v61 }
 0x5d2   : > { %3903 = vrcp.f32 %v1919_v20 }
 0x5da   : > { %v3900_v11 = vpop.eup %3899 }
 0x5db   : > { %v3902_v15 = vpop.eup %3901  ;;  %v1923_v17 = vmul.f32 %v3900_v11, %v3898_v10 }
 0x5dc   : > { %v1922_v21 = vmul.f32 %v3902_v15, %v4869_v28  ;;  %v3904_v33 = vpop.eup %3903 }
 0x5de   : > { %v4911_v24 = vadd.f32 %v1923_v17, %v1922_v21 }
 0x5e0   : > { %3905 = vtanh.f32 %v4911_v24 }
 0x5ea   : > { %v3906_v34 = vpop.eup %3905 }
 0x5eb   : > { %v1926_v39 = vmul.f32 %v3906_v34, %v3904_v33 }
 0x5ed   : > { %1928 = vst [vmem:[#allocation2 + $0x18] sm:$0xff] %v1926_v39  ;;  %2001 = vmatmul.mubr.f32.vlgmr.msra.gmra.mrb[8].mxu0 %v1926_v39  ;;  %2072 = vmatmul.mubr.f32.vlgmr.msra.gmra.mrb[8].mxu1 %v1926_v39 }
 0x5ee   : > { %3453 = vmatpush1.bf16.msra.mxu0 %v4572_v50  ;;  %3485 = vmatpush1.bf16.msra.mxu1 %v4577_v53 }
 0x5ef   : > { %3455 = vmatprep.subr.bf16.mxu0 %v4582_v13  ;;  %3487 = vmatprep.subr.bf16.mxu1 %v4586_v62 }
 0x5f0   : > { %2179 = vmatprep.mubr.f32.mxu0 %v4156_v6  ;;  %2250 = vmatprep.mubr.f32.mxu1 %v4156_v6 }
 0x5f2   : > { %3457 = vmatpush1.bf16.msra.mxu0 %v4591_v2  ;;  %3489 = vmatpush1.bf16.msra.mxu1 %v4597_v5 }
 0x5f3   : > { %3459 = vmatprep.subr.bf16.mxu0 %v4603_v49  ;;  %3491 = vmatprep.subr.bf16.mxu1 %v4608_v57 }
 0x5f6   : > { %3461 = vmatpush1.bf16.msra.mxu0 %v4613_v9  ;;  %3493 = vmatpush1.bf16.msra.mxu1 %v4619_v12 }
 0x5f7   : > { %3463 = vmatprep.subr.bf16.mxu0 %v4625_v16  ;;  %3495 = vmatprep.subr.bf16.mxu1 %v4630_v19 }
 0x5fa   : > { %3465 = vmatpush1.bf16.msra.mxu0 %v4635_v23  ;;  %3497 = vmatpush1.bf16.msra.mxu1 %v4641_v26 }
 0x5fb   : > { %3467 = vmatprep.subr.bf16.mxu0 %v4647_v29  ;;  %3499 = vmatprep.subr.bf16.mxu1 %v4652_v32 }
 0x5fe   : > { %3469 = vmatpush1.bf16.msra.mxu0 %v4657_v36  ;;  %3501 = vmatpush1.bf16.msra.mxu1 %v4663_v40 }
 0x5ff   : > { %3471 = vmatprep.subr.bf16.mxu0 %v4669_v46  ;;  %3503 = vmatprep.subr.bf16.mxu1 %v4674_v51 }
 0x602   : > { %3473 = vmatpush1.bf16.msra.mxu0 %v4679_v59  ;;  %3505 = vmatpush1.bf16.msra.mxu1 %v4685_v0 }
 0x603   : > { %3475 = vmatprep.subr.bf16.mxu0 %v4691_v4  ;;  %3507 = vmatprep.subr.bf16.mxu1 %v4696_v54 }
 0x606   : > { %3477 = vmatpush1.bf16.msra.mxu0 %v4701_v8  ;;  %3509 = vmatpush1.bf16.msra.mxu1 %v4707_v14 }
 0x607   : > { %3479 = vmatprep.subr.bf16.mxu0 %v4713_v18  ;;  %3511 = vmatprep.subr.bf16.mxu1 %v4718_v22 }
 0x60a   : > { %3481 = vmatpush1.bf16.msra.mxu0 %v4721_v25  ;;  %3513 = vmatpush1.bf16.msra.mxu1 %v4725_v27 }
 0x60b   : > { %3515 = vmatprep.subr.bf16.mxu0 %v4562_v38  ;;  %3547 = vmatprep.subr.bf16.mxu1 %v4566_v43 }
 0x6c0   : > { %v2002_v28 = vpop.f32.mrb[8].mxu0  ;;  %v2073_v30 = vpop.f32.mrb[8].mxu1 }
 0x6c1   : > { %v3684_v31 = vadd.f32 %v2002_v28, %v4773_v35  ;;  %v2004_v44 = vpop.f32.mrb[9].mxu0  ;;  %v2075_v45 = vpop.f32.mrb[9].mxu1  ;;  %v3700_v60 = vadd.f32 %v2073_v30, %v4782_v41 }
 0x6c2   : > { %v3685_v47 = vadd.f32 %v2004_v44, %v4775_v37  ;;  %v3701_v56 = vadd.f32 %v2075_v45, %v4779_v63 }
 0x6c3   : > { %v2948_v48 = vmul.f32 -1.442695, %v3684_v31 }
 0x6c4   : > { %v2949_v52 = vmul.f32 -1.442695, %v3685_v47  ;;  %v2950_v58 = vmul.f32 -1.442695, %v3701_v56 }
 0x6c5   : > { %3907 = vpow2.f32 %v2948_v48 }
 0x6c6   : > { %3909 = vpow2.f32 %v2949_v52 }
 0x6c7   : > { %3911 = vpow2.f32 %v2950_v58 }
 0x6c8   : > { %3913 = vtanh.f32 %v3700_v60 }
 0x6cf   : > { %v3908_v1 = vpop.eup %3907 }
 0x6d0   : > { %v3910_v3 = vpop.eup %3909  ;;  %v2085_v42 = vadd.f32 1.0, %v3908_v1 }
 0x6d1   : > { %v2091_v55 = vadd.f32 1.0, %v3910_v3  ;;  %v3912_v61 = vpop.eup %3911 }
 0x6d2   : > { %3915 = vrcp.f32 %v2085_v42  ;;  %v3914_v7 = vpop.eup %3913  ;;  %v2098_v17 = vadd.f32 1.0, %v3912_v61 }
 0x6d3   : > { %3917 = vrcp.f32 %v2091_v55 }
 0x6d4   : > { %3919 = vrcp.f32 %v2098_v17 }
 0x6dc   : > { %v3916_v10 = vpop.eup %3915 }
 0x6dd   : > { %v3918_v11 = vpop.eup %3917  ;;  %v2102_v15 = vmul.f32 %v3916_v10, %v3914_v7 }
 0x6de   : > { %v2101_v20 = vmul.f32 %v3918_v11, %v4911_v24  ;;  %v3920_v33 = vpop.eup %3919 }
 0x6e0   : > { %v4953_v21 = vadd.f32 %v2102_v15, %v2101_v20 }
 0x6e2   : > { %3921 = vtanh.f32 %v4953_v21 }
 0x6ec   : > { %v3922_v34 = vpop.eup %3921 }
 0x6ed   : > { %v2105_v39 = vmul.f32 %v3922_v34, %v3920_v33 }
 0x6ef   : > { %2107 = vst [vmem:[#allocation2 + $0x20] sm:$0xff] %v2105_v39  ;;  %2180 = vmatmul.mubr.f32.vlgmr.msra.gmra.mrb[10].mxu0 %v2105_v39  ;;  %2251 = vmatmul.mubr.f32.vlgmr.msra.gmra.mrb[10].mxu1 %v2105_v39 }
 0x6f0   : > { %3517 = vmatpush1.bf16.msra.mxu0 %v4572_v50  ;;  %3549 = vmatpush1.bf16.msra.mxu1 %v4577_v53 }
 0x6f1   : > { %3519 = vmatprep.subr.bf16.mxu0 %v4582_v13  ;;  %3551 = vmatprep.subr.bf16.mxu1 %v4586_v62 }
 0x6f2   : > { %2358 = vmatprep.mubr.f32.mxu0 %v4156_v6  ;;  %2429 = vmatprep.mubr.f32.mxu1 %v4156_v6 }
 0x6f4   : > { %3521 = vmatpush1.bf16.msra.mxu0 %v4591_v2  ;;  %3553 = vmatpush1.bf16.msra.mxu1 %v4597_v5 }
 0x6f5   : > { %3523 = vmatprep.subr.bf16.mxu0 %v4603_v49  ;;  %3555 = vmatprep.subr.bf16.mxu1 %v4608_v57 }
 0x6f8   : > { %3525 = vmatpush1.bf16.msra.mxu0 %v4613_v9  ;;  %3557 = vmatpush1.bf16.msra.mxu1 %v4619_v12 }
 0x6f9   : > { %3527 = vmatprep.subr.bf16.mxu0 %v4625_v16  ;;  %3559 = vmatprep.subr.bf16.mxu1 %v4630_v19 }
 0x6fc   : > { %3529 = vmatpush1.bf16.msra.mxu0 %v4635_v23  ;;  %3561 = vmatpush1.bf16.msra.mxu1 %v4641_v26 }
 0x6fd   : > { %3531 = vmatprep.subr.bf16.mxu0 %v4647_v29  ;;  %3563 = vmatprep.subr.bf16.mxu1 %v4652_v32 }
 0x700   : > { %3533 = vmatpush1.bf16.msra.mxu0 %v4657_v36  ;;  %3565 = vmatpush1.bf16.msra.mxu1 %v4663_v40 }
 0x701   : > { %3535 = vmatprep.subr.bf16.mxu0 %v4669_v46  ;;  %3567 = vmatprep.subr.bf16.mxu1 %v4674_v51 }
 0x704   : > { %3537 = vmatpush1.bf16.msra.mxu0 %v4679_v59  ;;  %3569 = vmatpush1.bf16.msra.mxu1 %v4685_v0 }
 0x705   : > { %3539 = vmatprep.subr.bf16.mxu0 %v4691_v4  ;;  %3571 = vmatprep.subr.bf16.mxu1 %v4696_v54 }
 0x708   : > { %3541 = vmatpush1.bf16.msra.mxu0 %v4701_v8  ;;  %3573 = vmatpush1.bf16.msra.mxu1 %v4707_v14 }
 0x709   : > { %3543 = vmatprep.subr.bf16.mxu0 %v4713_v18  ;;  %3575 = vmatprep.subr.bf16.mxu1 %v4718_v22 }
 0x70c   : > { %3545 = vmatpush1.bf16.msra.mxu0 %v4721_v25  ;;  %3577 = vmatpush1.bf16.msra.mxu1 %v4725_v27 }
 0x70d   : > { %3579 = vmatprep.subr.bf16.mxu0 %v4562_v38  ;;  %3611 = vmatprep.subr.bf16.mxu1 %v4566_v43 }
 0x7c2   : > { %v2181_v24 = vpop.f32.mrb[10].mxu0  ;;  %v2252_v28 = vpop.f32.mrb[10].mxu1 }
 0x7c3   : > { %v3686_v30 = vadd.f32 %v2181_v24, %v4773_v35  ;;  %v2183_v31 = vpop.f32.mrb[11].mxu0  ;;  %v2254_v44 = vpop.f32.mrb[11].mxu1  ;;  %v3702_v58 = vadd.f32 %v2252_v28, %v4782_v41 }
 0x7c4   : > { %v3687_v45 = vadd.f32 %v2183_v31, %v4775_v37  ;;  %v3703_v52 = vadd.f32 %v2254_v44, %v4779_v63 }
 0x7c5   : > { %v2951_v47 = vmul.f32 -1.442695, %v3686_v30 }
 0x7c6   : > { %v2952_v48 = vmul.f32 -1.442695, %v3687_v45  ;;  %v2953_v56 = vmul.f32 -1.442695, %v3703_v52 }
 0x7c7   : > { %3923 = vpow2.f32 %v2951_v47 }
 0x7c8   : > { %3925 = vpow2.f32 %v2952_v48 }
 0x7c9   : > { %3927 = vpow2.f32 %v2953_v56 }
 0x7ca   : > { %3929 = vtanh.f32 %v3702_v58 }
 0x7d1   : > { %v3924_v38 = vpop.eup %3923 }
 0x7d2   : > { %v3926_v60 = vpop.eup %3925  ;;  %v2264_v43 = vadd.f32 1.0, %v3924_v38 }
 0x7d3   : > { %v2270_v1 = vadd.f32 1.0, %v3926_v60  ;;  %v3928_v3 = vpop.eup %3927 }
 0x7d4   : > { %3931 = vrcp.f32 %v2264_v43  ;;  %v3930_v42 = vpop.eup %3929  ;;  %v2277_v10 = vadd.f32 1.0, %v3928_v3  ;;  %v2658_v3 = vld [vmem:[#allocation9 + $0x8] sm:$0xff] (!%p2960_p10) }
 0x7d5   : > { %3933 = vrcp.f32 %v2270_v1  ;;  %v2657_v1 = vld [vmem:[#allocation9] sm:$0xff] (!%p2960_p10) }
 0x7d6   : > { %3935 = vrcp.f32 %v2277_v10  ;;  %v2661_v10 = vld [vmem:[#allocation9 + $0x20] sm:$0xff] (!%p2960_p10) }
 0x7de   : > { %v3932_v55 = vpop.eup %3931 }
 0x7df   : > { %v3934_v61 = vpop.eup %3933  ;;  %v2281_v7 = vmul.f32 %v3932_v55, %v3930_v42  ;;  %v2659_v42 = vld [vmem:[#allocation9 + $0x10] sm:$0xff] (!%p2960_p10)  ;;  %v3642_v55 = vpack.c.bf16 (!%p2960_p10), %v2658_v3, %v2657_v1 }
 0x7e0   : > { %v2280_v11 = vmul.f32 %v3934_v61, %v4953_v21  ;;  %v3936_v17 = vpop.eup %3935  ;;  %v2660_v61 = vld [vmem:[#allocation9 + $0x18] sm:$0xff] (!%p2960_p10) }
 0x7e2   : > { %v4995_v15 = vadd.f32 %v2281_v7, %v2280_v11  ;;  %v3646_v7 = vpack.c.bf16 (!%p2960_p10), %v2660_v61, %v2659_v42  ;;  %v2662_v11 = vld [vmem:[#allocation9 + $0x28] sm:$0xff] (!%p2960_p10) }
 0x7e4   : > { %3937 = vtanh.f32 %v4995_v15 }
 0x7ee   : > { %v3938_v20 = vpop.eup %3937 }
 0x7ef   : > { %v2284_v33 = vmul.f32 %v3938_v20, %v3936_v17  ;;  %v2649_v17 = vld [vmem:[#allocation2] sm:$0xff] (!%p2960_p10) }
 0x7f0   : > { %v2653_v20 = vld [vmem:[#allocation2 + $0x20] sm:$0xff] (!%p2960_p10) }
 0x7f1   : > { %2286 = vst [vmem:[#allocation2 + $0x28] sm:$0xff] %v2284_v33  ;;  %2359 = vmatmul.mubr.f32.vlgmr.msra.gmra.mrb[12].mxu0 %v2284_v33  ;;  %2430 = vmatmul.mubr.f32.vlgmr.msra.gmra.mrb[12].mxu1 %v2284_v33  ;;  %v2663_v33 = vld [vmem:[#allocation9 + $0x30] sm:$0xff] (!%p2960_p10) }
 0x7f2   : > { %3581 = vmatpush1.bf16.msra.mxu0 %v4572_v50  ;;  %3613 = vmatpush1.bf16.msra.mxu1 %v4577_v53 }
 0x7f3   : > { %3583 = vmatprep.subr.bf16.mxu0 %v4582_v13  ;;  %3615 = vmatprep.subr.bf16.mxu1 %v4586_v62 }
 0x7f4   : > { %2537 = vmatprep.mubr.f32.mxu0 %v4156_v6  ;;  %2608 = vmatprep.mubr.f32.mxu1 %v4156_v6 }
 0x7f6   : > { %3585 = vmatpush1.bf16.msra.mxu0 %v4591_v2  ;;  %3617 = vmatpush1.bf16.msra.mxu1 %v4597_v5 }
 0x7f7   : > { %3587 = vmatprep.subr.bf16.mxu0 %v4603_v49  ;;  %3619 = vmatprep.subr.bf16.mxu1 %v4608_v57 }
 0x7fa   : > { %3589 = vmatpush1.bf16.msra.mxu0 %v4613_v9  ;;  %3621 = vmatpush1.bf16.msra.mxu1 %v4619_v12 }
 0x7fb   : > { %3591 = vmatprep.subr.bf16.mxu0 %v4625_v16  ;;  %3623 = vmatprep.subr.bf16.mxu1 %v4630_v19 }
 0x7fe   : > { %3593 = vmatpush1.bf16.msra.mxu0 %v4635_v23  ;;  %3625 = vmatpush1.bf16.msra.mxu1 %v4641_v26 }
 0x7ff   : > { %3595 = vmatprep.subr.bf16.mxu0 %v4647_v29  ;;  %3627 = vmatprep.subr.bf16.mxu1 %v4652_v32 }
 0x802   : > { %3597 = vmatpush1.bf16.msra.mxu0 %v4657_v36  ;;  %3629 = vmatpush1.bf16.msra.mxu1 %v4663_v40 }
 0x803   : > { %3599 = vmatprep.subr.bf16.mxu0 %v4669_v46  ;;  %3631 = vmatprep.subr.bf16.mxu1 %v4674_v51 }
 0x806   : > { %3601 = vmatpush1.bf16.msra.mxu0 %v4679_v59  ;;  %3633 = vmatpush1.bf16.msra.mxu1 %v4685_v0 }
 0x807   : > { %3603 = vmatprep.subr.bf16.mxu0 %v4691_v4  ;;  %3635 = vmatprep.subr.bf16.mxu1 %v4696_v54 }
 0x80a   : > { %3605 = vmatpush1.bf16.msra.mxu0 %v4701_v8  ;;  %3637 = vmatpush1.bf16.msra.mxu1 %v4707_v14 }
 0x80b   : > { %3607 = vmatprep.subr.bf16.mxu0 %v4713_v18  ;;  %3639 = vmatprep.subr.bf16.mxu1 %v4718_v22 }
 0x80e   : > { %3609 = vmatpush1.bf16.msra.mxu0 %v4721_v25  ;;  %3641 = vmatpush1.bf16.msra.mxu1 %v4725_v27 }
 0x80f   : > { %3643 = vmatprep.subr.bf16.mxu0 (!%p2960_p10), %v3642_v55  ;;  %3740 = vmatprep.subr.bf16.mxu1 (!%p2960_p10), %v3642_v55 }
 0x8c4   : > { %v2360_v6 = vpop.f32.mrb[12].mxu0  ;;  %v2431_v50 = vpop.f32.mrb[12].mxu1 }
 0x8c5   : > { %v3688_v53 = vadd.f32 %v2360_v6, %v4773_v35  ;;  %v2362_v13 = vpop.f32.mrb[13].mxu0  ;;  %v2433_v62 = vpop.f32.mrb[13].mxu1  ;;  %v3704_v12 = vadd.f32 %v2431_v50, %v4782_v41  ;;  %v2664_v6 = vld [vmem:[#allocation9 + $0x38] sm:$0xff] (!%p2960_p10) }
 0x8c6   : > { %v3689_v2 = vadd.f32 %v2362_v13, %v4775_v37  ;;  %v3705_v57 = vadd.f32 %v2433_v62, %v4779_v63  ;;  %v3654_v50 = vpack.c.bf16 (!%p2960_p10), %v2664_v6, %v2663_v33  ;;  %v2666_v13 = vld [vmem:[#allocation9 + $0x48] sm:$0xff] (!%p2960_p10) }
 0x8c7   : > { %v2954_v5 = vmul.f32 -1.442695, %v3688_v53  ;;  %v2665_v53 = vld [vmem:[#allocation9 + $0x40] sm:$0xff] (!%p2960_p10) }
 0x8c8   : > { %v2955_v49 = vmul.f32 -1.442695, %v3689_v2  ;;  %v2956_v9 = vmul.f32 -1.442695, %v3705_v57  ;;  %v3658_v62 = vpack.c.bf16 (!%p2960_p10), %v2666_v13, %v2665_v53  ;;  %v2667_v2 = vld [vmem:[#allocation9 + $0x50] sm:$0xff] (!%p2960_p10)  ;;  %v2669_v57 = vld [vmem:[#allocation9 + $0x60] sm:$0xff] (!%p2960_p10) }
 0x8c9   : > { %3939 = vpow2.f32 %v2954_v5  ;;  %v2668_v5 = vld [vmem:[#allocation9 + $0x58] sm:$0xff] (!%p2960_p10) }
 0x8ca   : > { %3941 = vpow2.f32 %v2955_v49  ;;  %v3662_v49 = vpack.c.bf16 (!%p2960_p10), %v2668_v5, %v2667_v2 }
 0x8cb   : > { %3943 = vpow2.f32 %v2956_v9  ;;  %v2670_v9 = vld [vmem:[#allocation9 + $0x68] sm:$0xff] (!%p2960_p10) }
 0x8cc   : > { %3945 = vtanh.f32 %v3704_v12  ;;  %v3666_v12 = vpack.c.bf16 (!%p2960_p10), %v2670_v9, %v2669_v57 }
 0x8d3   : > { %v3940_v16 = vpop.eup %3939 }
 0x8d4   : > { %v3942_v19 = vpop.eup %3941  ;;  %v2443_v23 = vadd.f32 1.0, %v3940_v16  ;;  %v2671_v16 = vld [vmem:[#allocation9 + $0x70] sm:$0xff] (!%p2960_p10) }
 0x8d5   : > { %v2449_v26 = vadd.f32 1.0, %v3942_v19  ;;  %v3944_v29 = vpop.eup %3943  ;;  %v2672_v19 = vld [vmem:[#allocation9 + $0x78] sm:$0xff] (!%p2960_p10) }
 0x8d6   : > { %3947 = vrcp.f32 %v2443_v23  ;;  %v3946_v32 = vpop.eup %3945  ;;  %v2456_v51 = vadd.f32 1.0, %v3944_v29  ;;  %v3670_v23 = vpack.c.bf16 (!%p2960_p10), %v2672_v19, %v2671_v16  ;;  %v2654_v29 = vld [vmem:[#allocation2 + $0x28] sm:$0xff] (!%p2960_p10) }
 0x8d7   : > { %3949 = vrcp.f32 %v2449_v26  ;;  %v2650_v26 = vld [vmem:[#allocation2 + $0x8] sm:$0xff] (!%p2960_p10) }
 0x8d8   : > { %3951 = vrcp.f32 %v2456_v51  ;;  %v2961_v51 = vld [vmem:[%s5088_s9] ss:$0 sm:$0xff] (!%p2960_p10) }
 0x8e0   : > { %v3948_v36 = vpop.eup %3947 }
 0x8e1   : > { %v3950_v40 = vpop.eup %3949  ;;  %v2460_v46 = vmul.f32 %v3948_v36, %v3946_v32  ;;  %v2651_v32 = vld [vmem:[#allocation2 + $0x10] sm:$0xff] (!%p2960_p10) }
 0x8e2   : > { %v2459_v59 = vmul.f32 %v3950_v40, %v4995_v15  ;;  %v3952_v4 = vpop.eup %3951  ;;  %v3650_v15 = vpack.c.bf16 (!%p2960_p10), %v2662_v11, %v2661_v10  ;;  %v2652_v40 = vld [vmem:[#allocation2 + $0x18] sm:$0xff] (!%p2960_p10) }
 0x8e4   : > { %v2461_v0 = vadd.f32 %v2460_v46, %v2459_v59 }
 0x8e6   : > { %3953 = vtanh.f32 %v2461_v0 }
 0x8f0   : > { %v3954_v54 = vpop.eup %3953 }
 0x8f1   : > { %v2463_v8 = vmul.f32 %v3954_v54, %v3952_v4 }
 0x8f3   : > { %2465 = vst [vmem:[#allocation2 + $0x30] sm:$0xff] %v2463_v8  ;;  %2538 = vmatmul.mubr.f32.vlgmr.msra.gmra.mrb[14].mxu0 %v2463_v8  ;;  %2609 = vmatmul.mubr.f32.vlgmr.msra.gmra.mrb[14].mxu1 %v2463_v8 }
 0x8f4   : > { %3645 = vmatpush3.bf16.msra.mxu0 (!%p2960_p10), %v3642_v55  ;;  %3748 = vmatpush3.bf16.msra.mxu1 (!%p2960_p10), %v3642_v55 }
 0x8f5   : > { %3647 = vmatprep.subr.bf16.mxu0 (!%p2960_p10), %v3646_v7  ;;  %3741 = vmatprep.subr.bf16.mxu1 (!%p2960_p10), %v3646_v7 }
 0x8f6   : > { %3050 = vmatprep.mubr.f32.mxu0 (!%p2960_p10), %v2649_v17  ;;  %3056 = vmatprep.mubr.f32.mxu1 (!%p2960_p10), %v2653_v20 }
 0x8f8   : > { %3649 = vmatpush3.bf16.msra.mxu0 (!%p2960_p10), %v3646_v7  ;;  %3749 = vmatpush3.bf16.msra.mxu1 (!%p2960_p10), %v3646_v7 }
 0x8f9   : > { %3651 = vmatprep.subr.bf16.mxu0 (!%p2960_p10), %v3650_v15  ;;  %3742 = vmatprep.subr.bf16.mxu1 (!%p2960_p10), %v3650_v15 }
 0x8fa   : > { %v2655_v36 = vld [vmem:[#allocation2 + $0x30] sm:$0xff] (!%p2960_p10) }
 0x8fc   : > { %3653 = vmatpush3.bf16.msra.mxu0 (!%p2960_p10), %v3650_v15  ;;  %3750 = vmatpush3.bf16.msra.mxu1 (!%p2960_p10), %v3650_v15 }
 0x8fd   : > { %3655 = vmatprep.subr.bf16.mxu0 (!%p2960_p10), %v3654_v50  ;;  %3743 = vmatprep.subr.bf16.mxu1 (!%p2960_p10), %v3654_v50 }
 0x900   : > { %3657 = vmatpush3.bf16.msra.mxu0 (!%p2960_p10), %v3654_v50  ;;  %3751 = vmatpush3.bf16.msra.mxu1 (!%p2960_p10), %v3654_v50 }
 0x901   : > { %3659 = vmatprep.subr.bf16.mxu0 (!%p2960_p10), %v3658_v62  ;;  %3744 = vmatprep.subr.bf16.mxu1 (!%p2960_p10), %v3658_v62 }
 0x904   : > { %3661 = vmatpush3.bf16.msra.mxu0 (!%p2960_p10), %v3658_v62  ;;  %3752 = vmatpush3.bf16.msra.mxu1 (!%p2960_p10), %v3658_v62 }
 0x905   : > { %3663 = vmatprep.subr.bf16.mxu0 (!%p2960_p10), %v3662_v49  ;;  %3745 = vmatprep.subr.bf16.mxu1 (!%p2960_p10), %v3662_v49 }
 0x908   : > { %3665 = vmatpush3.bf16.msra.mxu0 (!%p2960_p10), %v3662_v49  ;;  %3753 = vmatpush3.bf16.msra.mxu1 (!%p2960_p10), %v3662_v49 }
 0x909   : > { %3667 = vmatprep.subr.bf16.mxu0 (!%p2960_p10), %v3666_v12  ;;  %3746 = vmatprep.subr.bf16.mxu1 (!%p2960_p10), %v3666_v12 }
 0x90c   : > { %3669 = vmatpush3.bf16.msra.mxu0 (!%p2960_p10), %v3666_v12  ;;  %3754 = vmatpush3.bf16.msra.mxu1 (!%p2960_p10), %v3666_v12 }
 0x90d   : > { %3671 = vmatprep.subr.bf16.mxu0 (!%p2960_p10), %v3670_v23  ;;  %3747 = vmatprep.subr.bf16.mxu1 (!%p2960_p10), %v3670_v23 }
 0x910   : > { %3673 = vmatpush3.bf16.msra.mxu0 (!%p2960_p10), %v3670_v23  ;;  %3755 = vmatpush3.bf16.msra.mxu1 (!%p2960_p10), %v3670_v23 }
 0x913   : > { %3051 = vmatmul.mubr.f32.vlgmr.msra.gmra.mrb[0].mxu0 (!%p2960_p10), %v2650_v26  ;;  %3057 = vmatmul.mubr.f32.vlgmr.msra.gmra.mrb[0].mxu1 (!%p2960_p10), %v2654_v29 }
 0x914   : > { %3053 = vmatprep.mubr.f32.mxu0 (!%p2960_p10), %v2651_v32  ;;  %3059 = vmatprep.mubr.f32.mxu1 (!%p2960_p10), %v2655_v36 }
 0x917   : > { %3054 = vmatmul.mubr.f32.gmra.mrb[2].mxu0 (!%p2960_p10), %v2652_v40 }
 0x9c6   : > { %v2539_v14 = vpop.f32.mrb[14].mxu0  ;;  %v2610_v18 = vpop.f32.mrb[14].mxu1 }
 0x9c7   : > { %v3690_v22 = vadd.f32 %v2539_v14, %v4773_v35  ;;  %v2541_v25 = vpop.f32.mrb[15].mxu0  ;;  %v2612_v27 = vpop.f32.mrb[15].mxu1  ;;  %v3706_v30 = vadd.f32 %v2610_v18, %v4782_v41 }
 0x9c8   : > { %v3691_v21 = vadd.f32 %v2541_v25, %v4775_v37  ;;  %v3707_v24 = vadd.f32 %v2612_v27, %v4779_v63 }
 0x9c9   : > { %v2957_v34 = vmul.f32 -1.442695, %v3690_v22 }
 0x9ca   : > { %v2958_v39 = vmul.f32 -1.442695, %v3691_v21  ;;  %v2959_v28 = vmul.f32 -1.442695, %v3707_v24 }
 0x9cb   : > { %3955 = vpow2.f32 %v2957_v34 }
 0x9cc   : > { %3957 = vpow2.f32 %v2958_v39 }
 0x9cd   : > { %3959 = vpow2.f32 %v2959_v28 }
 0x9ce   : > { %3961 = vtanh.f32 %v3706_v30 }
 0x9d5   : > { %v3956_v31 = vpop.eup %3955 }
 0x9d6   : > { %v3958_v44 = vpop.eup %3957  ;;  %v2622_v45 = vadd.f32 1.0, %v3956_v31 }
 0x9d7   : > { %v2628_v47 = vadd.f32 1.0, %v3958_v44  ;;  %v3960_v35 = vpop.eup %3959 }
 0x9d8   : > { %3963 = vrcp.f32 %v2622_v45  ;;  %v3962_v48 = vpop.eup %3961  ;;  %v2635_v58 = vadd.f32 1.0, %v3960_v35 }
 0x9d9   : > { %3965 = vrcp.f32 %v2628_v47 }
 0x9da   : > { %3967 = vrcp.f32 %v2635_v58 }
 0x9e2   : > { %v3964_v37 = vpop.eup %3963 }
 0x9e3   : > { %v3966_v52 = vpop.eup %3965  ;;  %v2639_v56 = vmul.f32 %v3964_v37, %v3962_v48 }
 0x9e4   : > { %v2638_v38 = vmul.f32 %v3966_v52, %v2461_v0  ;;  %v3968_v63 = vpop.eup %3967 }
 0x9e6   : > { %v2640_v60 = vadd.f32 %v2639_v56, %v2638_v38  ;;  %v3052_v59 = vpop.f32.mrb[0].mxu0 (!%p2960_p10)  ;;  %v3058_v0 = vpop.f32.mrb[0].mxu1 (!%p2960_p10) }
 0x9e7   : > { %v2752_v4 = vadd.f32 (!%p2960_p10), %v3052_v59, %v2961_v51  ;;  %v2772_v54 = vadd.f32 (!%p2960_p10), %v3058_v0, %v2961_v51  ;;  %v2746_v8 = vpop.f32.mrb[1].mxu0 (!%p2960_p10)  ;;  %v2766_v14 = vpop.f32.mrb[1].mxu1 (!%p2960_p10) }
 0x9e8   : > { %3969 = vtanh.f32 %v2640_v60  ;;  %v2747_v18 = vadd.f32 (!%p2960_p10), %v2961_v51, %v2746_v8  ;;  %v2767_v22 = vadd.f32 (!%p2960_p10), %v2961_v51, %v2766_v14 }
 0x9e9   : > { %3971 = vtanh.f32 (!%p2960_p10), %v2752_v4 }
 0x9ea   : > { %3973 = vtanh.f32 (!%p2960_p10), %v2772_v54  ;;  %v3055_v25 = vpop.f32.mrb[2].mxu0 (!%p2960_p10) }
 0x9eb   : > { %3975 = vtanh.f32 (!%p2960_p10), %v2747_v18  ;;  %v2762_v21 = vadd.f32 (!%p2960_p10), %v3055_v25, %v2961_v51  ;;  %v2756_v39 = vpop.f32.mrb[3].mxu0 (!%p2960_p10) }
 0x9ec   : > { %3977 = vtanh.f32 (!%p2960_p10), %v2767_v22  ;;  %v2757_v28 = vadd.f32 (!%p2960_p10), %v2961_v51, %v2756_v39 }
 0x9ed   : > { %3979 = vtanh.f32 (!%p2960_p10), %v2762_v21 }
 0x9ef   : > { %2648 = sbr.rel (%p2960_p10) target bundleno = 2785 (0xae1), region = 80 }
 0x9f2   : > { %v3970_v41 = vpop.eup %3969 }
 0x9f3   : > { %v2642_v43 = vmul.f32 %v3970_v41, %v3968_v63  ;;  %v3972_v31 = vpop.eup (!%p2960_p10), %3971 }
 0x9f4   : > { %v3974_v44 = vpop.eup (!%p2960_p10), %3973  ;;  %2794 = vst [vmem:[#allocation10 + $0x8] sm:$0xff] (!%p2960_p10), %v3972_v31 }
 0x9f5   : > { %2644 = vst [vmem:[#allocation2 + $0x38] sm:$0xff] %v2642_v43  ;;  %v3976_v45 = vpop.eup (!%p2960_p10), %3975  ;;  %2798 = vst [vmem:[#allocation10 + $0x28] sm:$0xff] (!%p2960_p10), %v3974_v44 }
 0x9f6   : > { %v3978_v47 = vpop.eup %3977  ;;  %2793 = vst [vmem:[#allocation10] sm:$0xff] %v3976_v45 }
 0x9f7   : > { %v3980_v35 = vpop.eup %3979  ;;  %2797 = vst [vmem:[#allocation10 + $0x20] sm:$0xff] %v3978_v47 }
 0x9f8   : > { %2796 = vst [vmem:[#allocation10 + $0x18] sm:$0xff] %v3980_v35 }
 0x9fc   : > { %v2656_v46 = vld [vmem:[#allocation2 + $0x38] sm:$0xff] }
 0x9fd   : > { %3060 = vmatmul.mubr.f32.gmra.mrb[2].mxu1 %v2656_v46 }
 0xad0   : > { %v3061_v27 = vpop.f32.mrb[2].mxu1 }
 0xad1   : > { %v2782_v34 = vadd.f32 %v3061_v27, %v2961_v51  ;;  %v2776_v24 = vpop.f32.mrb[3].mxu1 }
 0xad2   : > { %v2777_v30 = vadd.f32 %v2961_v51, %v2776_v24 }
 0xad3   : > { %3981 = vtanh.f32 %v2782_v34 }
 0xad4   : > { %3983 = vtanh.f32 %v2757_v28 }
 0xad5   : > { %3985 = vtanh.f32 %v2777_v30 }
 0xadd   : > { %v3982_v48 = vpop.eup %3981 }
 0xade   : > { %v3984_v37 = vpop.eup %3983  ;;  %2800 = vst [vmem:[#allocation10 + $0x38] sm:$0xff] %v3982_v48 }
 0xadf   : > { %v3986_v52 = vpop.eup %3985  ;;  %2795 = vst [vmem:[#allocation10 + $0x10] sm:$0xff] %v3984_v37 }
 0xae0   : > { %2799 = vst [vmem:[#allocation10 + $0x30] sm:$0xff] %v3986_v52 }
 0xae1 PF: > { %p3782_p12 = scmp.eq.s32.totalorder %s4234_s17, 1  ;;  %s4157_s13 = smov [#allocation10]  }
 0xae2   : > { %s2807_s24 = sshll.u32 %s4157_s13, 4  ;;  %s2808_s24 = int_to_ptr.vmem [resolvable:$true] %s2807_s24 }
 0xae3   : > { %s4075_s25 = scalar_lea.vmem %s2808_s24, 1024  ;;  %p4082_p3 = scmp.lt.s32.totalorder %s2808_s24, %s2808_s24 }
 0xae4   : > { %p4076_p0 = scmp.ne.s32.totalorder %s2808_s24, %s4075_s25  ;;  %p4083_p9 = scmp.lt.s32.totalorder %s4075_s25, %s4075_s25 }
 0xae6   : > { %p4077_p2 = pnand %p4076_p0, %p3782_p12  ;;  %p4084_p1 = por %p4083_p9, %p4082_p3 }
 0xae8   : > { %p4078_p13 = pneg %p4077_p2 }
 0xaea   : > { %p4085_p11 = pnand %p4084_p1, %p4078_p13 }
 0xaec   : > { %4088 = shalt.err (!%p4085_p11)
}
 0xaed   : > { %s4089_s28 = scalar_lea.hbm %s5089_s10, 1024 }
 0xaee   : > { %p4090_p7 = scmp.ne.s32.totalorder %s5089_s10, %s4089_s28  ;;  %p4095_p5 = scmp.lt.u32.totalorder %s4089_s28, %s5089_s10 }
 0xaf0   : > { %p4091_p8 = pnand %p4090_p7, %p3782_p12 }
 0xaf2   : > { %p4092_p4 = pneg %p4091_p8 }
 0xaf4   : > { %p4097_p6 = pnand %p4095_p5, %p4092_p4 }
 0xaf6   : > { %4100 = shalt.err (!%p4097_p6)
}
 0xaf7   : > { %s4158_s5 = smov 128   ;;  %s4159_s16 = smov 8  }
 0xaf8   : > { %3765 = dma.vmem_to_hbm [thread:$0]  (%p3782_p12), %s2808_s24, 1024, %s5089_s10, [#allocation6], %s4158_s5, %s4158_s5, %s4159_s16  }
 0xaf9   : > { %4130 = dma.done.wait (%p3782_p12), [#allocation6], 1024  }
 0xafa   : > { %4132 = vsyncadd (%p3782_p12), [#allocation6], 4294966272 }
 0xafb PF: > { %s5114_s16 = sld [smem:[#allocation15_spill]]  ;;  %s5115_s29 = sld [smem:[#allocation16_spill]] }
 0xafc   : > { %s5116_s13 = smov %s4139_s14  ;;  %s5117_s14 = smov %s4143_s15 }
 0xb01   : > { %p24_p10 = scmp.ge.s32.totalorder %s5114_s16, 4   ;;  %s5118_s15 = smov %s5115_s29 }
 0xb03   :  { %26 = sbr.rel (!%p24_p10) target bundleno = 9 (0x9), region = 140 }
 0xb0a   :  { %2823 = vsyncpa [#allocation5], 1 }
 0xb0b   :  { %2825 = vsyncpa [#allocation5 + $0x1], 1 }
 0xb0c   :  { %2826 = vsyncpa [#allocation8], 1 }
 0xb0d   :  { %2828 = vsyncpa [#allocation8 + $0x1], 1 }
 0xb0e   :  { %2829 = vsyncpa [#allocation6], 1 }
 0xb0f   :  { %2831 = vsyncpa [#allocation6 + $0x1], 1 }

</bundles_post_ra>
